<compile_context>
chip_gen: v7x
topology: tpu7x:2x2x1
jax: 0.10.0
libtpu: 0.0.40
codegen_flags: <defaults>
</compile_context>

<pallas_src>
import jax
import jax.numpy as jnp
from jax.experimental import pallas as pl
from jax.experimental.pallas import tpu as pltpu


def _round_up(x, m):
    return (x + m - 1) // m * m


def _hybrid_kernel(ps_ref, tf_ref,
                   w_ih_ref, w_hh_ref, b_lstm_ref,
                   w_pfc_ref, b_pfc_ref,
                   w_team_ref, b_team_ref, bn1_scale_ref, bn1_shift_ref,
                   w_c1a_ref, w_c1b_ref, b_c1_ref, bn2_scale_ref, bn2_shift_ref,
                   w_c2_ref, b_c2_ref,
                   out_ref):
    T, Bt, F = ps_ref.shape            # time-major player stats tile (bf16)
    H = w_hh_ref.shape[0]
    f32 = jnp.float32
    bf16 = jnp.bfloat16

    w_hh = w_hh_ref[...]               # (H, 4H) bf16, gate order (i, f, o, g)

    # ---- hoisted input projection: ONE matmul for all T steps, bias folded ----
    # (T, Bt, F) -> (T*Bt, F) is a free collapse (Bt is a multiple of 8 sublanes).
    x_all = ps_ref[...].reshape(T * Bt, F)                            # bf16
    x_proj = (jnp.dot(x_all, w_ih_ref[...], preferred_element_type=f32)
              + b_lstm_ref[...])                                      # (T*Bt, 4H) f32

    # ---- recurrence: only h @ W_hh + gate math on the serial path ----
    h = jnp.zeros((Bt, H), f32)
    c = jnp.zeros((Bt, H), f32)
    for t in range(T):                 # fully unrolled: T static & small
        gates = (x_proj[t * Bt:(t + 1) * Bt, :]
                 + jnp.dot(h.astype(bf16), w_hh, preferred_element_type=f32))
        # gate layout (i, f, o, g): one sigmoid slab + one tanh slab per step
        sig = jax.nn.sigmoid(gates[:, :3 * H])
        g_g = jnp.tanh(gates[:, 3 * H:])
        i_g = sig[:, 0:H]
        f_g = sig[:, H:2 * H]
        o_g = sig[:, 2 * H:3 * H]
        c = f_g * c + i_g * g_g
        h = o_g * jnp.tanh(c)

    # ---- player_fc: Linear -> ReLU (Dropout = identity in eval) ----
    p = (jnp.dot(h.astype(bf16), w_pfc_ref[...], preferred_element_type=f32)
         + b_pfc_ref[...])
    p = jnp.maximum(p, 0.0)

    # ---- team_net: Linear -> BatchNorm1d (eval, folded) -> ReLU ----
    t_lin = (jnp.dot(tf_ref[...], w_team_ref[...], preferred_element_type=f32)
             + b_team_ref[...])
    t_out = jnp.maximum(t_lin * bn1_scale_ref[...] + bn1_shift_ref[...], 0.0)

    # ---- combined_net: concat(p, t_out) @ W fused as two matmuls ----
    c1 = (jnp.dot(p.astype(bf16), w_c1a_ref[...], preferred_element_type=f32)
          + jnp.dot(t_out.astype(bf16), w_c1b_ref[...], preferred_element_type=f32)
          + b_c1_ref[...])
    c1 = jnp.maximum(c1 * bn2_scale_ref[...] + bn2_shift_ref[...], 0.0)

    # Final Linear (128 -> 1), weight zero-padded to (128, 128): lane-dense
    # unmasked stores; only column 0 carries the real output.
    out = (jnp.dot(c1.astype(bf16), w_c2_ref[...], preferred_element_type=f32)
           + b_c2_ref[...])
    out_ref[...] = out


def hybrid_lstm_nba_forward(player_stats, team_features, params, *, block_b=128):
    """player_stats: (B, T, F_player) f32, team_features: (B, F_team) f32 -> (B,)"""
    B, T, F = player_stats.shape
    F_team = team_features.shape[1]
    H = params["w_hh"].shape[0]

    # batch tile: sublane-aligned, capped by block_b; pad B up to a multiple.
    bb = _round_up(max(8, min(block_b, _round_up(B, 8))), 8)
    B_pad = _round_up(B, bb)
    grid_b = B_pad // bb
    if B_pad != B:
        player_stats = jnp.pad(player_stats, ((0, B_pad - B), (0, 0), (0, 0)))
        team_features = jnp.pad(team_features, ((0, B_pad - B), (0, 0)))

    bf16 = jnp.bfloat16
    # Time-major so the hoisted projection is one big matmul and each unrolled
    # step slices a contiguous, tile-aligned (bb, 4H) row block.
    ps_tm = jnp.transpose(player_stats, (1, 0, 2)).astype(bf16)      # (T, B_pad, F)
    tf = team_features.astype(bf16)

    # Gate reorder (i, f, g, o) -> (i, f, o, g) so sigmoid gates are contiguous.
    def reorder(w):
        return jnp.concatenate(
            [w[:, :2 * H], w[:, 3 * H:4 * H], w[:, 2 * H:3 * H]], axis=1)

    w_ih = reorder(params["w_ih"]).astype(bf16)
    w_hh = reorder(params["w_hh"]).astype(bf16)
    b_lstm = reorder(params["b_lstm"])                               # f32 (folded once)

    # Pad the final 128 -> 1 linear to 128 output columns (lane-dense output).
    n_pad = 128 - params["w_c2"].shape[1]
    w_c2_pad = jnp.pad(params["w_c2"], ((0, 0), (0, n_pad))).astype(bf16)
    b_c2_pad = jnp.pad(params["b_c2"], ((0, 0), (0, n_pad)))

    weights = (w_ih, w_hh, b_lstm,
               params["w_pfc"].astype(bf16), params["b_pfc"],
               params["w_team"].astype(bf16), params["b_team"],
               params["bn1_scale"], params["bn1_shift"],
               params["w_c1a"].astype(bf16), params["w_c1b"].astype(bf16),
               params["b_c1"], params["bn2_scale"], params["bn2_shift"],
               w_c2_pad, b_c2_pad)

    def full_spec(a):
        zeros = (0,) * a.ndim
        return pl.BlockSpec(a.shape, lambda b, _z=zeros: _z)

    in_specs = ([pl.BlockSpec((T, bb, F), lambda b: (0, b, 0)),
                 pl.BlockSpec((bb, F_team), lambda b: (b, 0))]
                + [full_spec(w) for w in weights])

    out = pl.pallas_call(
        _hybrid_kernel,
        out_shape=jax.ShapeDtypeStruct((B_pad, 128), jnp.float32),
        grid=(grid_b,),
        in_specs=in_specs,
        out_specs=pl.BlockSpec((bb, 128), lambda b: (b, 0)),
        compiler_params=pltpu.CompilerParams(
            dimension_semantics=("parallel",)),   # batch tiles shard across TCs
    )(ps_tm, tf, *weights)
    return out[:B, 0]


def init_params(key,
                n_player_features=12, n_team_features=16, lstm_hidden_size=64,
                player_out_features=128, team_out_features=128,
                combined_hidden_features=128):
    """Deterministic init mirroring PyTorch default uniform(-1/sqrt(fan_in), ...).
    Weights stored transposed (in, out); LSTM gate order is PyTorch's (i,f,g,o)
    here — the wrapper reorders gates for the kernel."""
    H = lstm_hidden_size
    ks = jax.random.split(key, 16)

    def unif(k, shape, fan_in):
        bound = 1.0 / jnp.sqrt(jnp.float32(fan_in))
        return jax.random.uniform(k, shape, jnp.float32, -bound, bound)

    eps = 1e-5
    # Fresh BatchNorm1d in eval: gamma=1, beta=0, running_mean=0, running_var=1.
    bn_scale = jnp.full((1, 128), 1.0 / jnp.sqrt(1.0 + eps), jnp.float32)
    bn_shift = jnp.zeros((1, 128), jnp.float32)

    return {
        "w_ih": unif(ks[0], (n_player_features, 4 * H), H),
        "w_hh": unif(ks[1], (H, 4 * H), H),
        "b_lstm": unif(ks[2], (1, 4 * H), H) + unif(ks[3], (1, 4 * H), H),
        "w_pfc": unif(ks[4], (H, player_out_features), H),
        "b_pfc": unif(ks[5], (1, player_out_features), H),
        "w_team": unif(ks[6], (n_team_features, team_out_features), n_team_features),
        "b_team": unif(ks[7], (1, team_out_features), n_team_features),
        "bn1_scale": bn_scale,
        "bn1_shift": bn_shift,
        "w_c1a": unif(ks[8], (player_out_features, combined_hidden_features),
                      player_out_features + team_out_features),
        "w_c1b": unif(ks[9], (team_out_features, combined_hidden_features),
                      player_out_features + team_out_features),
        "b_c1": unif(ks[10], (1, combined_hidden_features),
                     player_out_features + team_out_features),
        "bn2_scale": bn_scale,
        "bn2_shift": bn_shift,
        "w_c2": unif(ks[11], (combined_hidden_features, 1), combined_hidden_features),
        "b_c2": unif(ks[12], (1, 1), combined_hidden_features),
    }


def _reference_forward(player_stats, team_features, params):
    """Pure-JAX f32 reference (PyTorch eval semantics, gate order i,f,g,o)."""
    B, T, _ = player_stats.shape
    H = params["w_hh"].shape[0]
    h = jnp.zeros((B, H), jnp.float32)
    c = jnp.zeros((B, H), jnp.float32)
    for t in range(T):
        gates = (player_stats[:, t, :] @ params["w_ih"]
                 + h @ params["w_hh"] + params["b_lstm"])
        i_g = jax.nn.sigmoid(gates[:, 0 * H:1 * H])
        f_g = jax.nn.sigmoid(gates[:, 1 * H:2 * H])
        g_g = jnp.tanh(gates[:, 2 * H:3 * H])
        o_g = jax.nn.sigmoid(gates[:, 3 * H:4 * H])
        c = f_g * c + i_g * g_g
        h = o_g * jnp.tanh(c)
    p = jnp.maximum(h @ params["w_pfc"] + params["b_pfc"], 0.0)
    t_out = jnp.maximum((team_features @ params["w_team"] + params["b_team"])
                        * params["bn1_scale"] + params["bn1_shift"], 0.0)
    c1 = p @ params["w_c1a"] + t_out @ params["w_c1b"] + params["b_c1"]
    c1 = jnp.maximum(c1 * params["bn2_scale"] + params["bn2_shift"], 0.0)
    return (c1 @ params["w_c2"] + params["b_c2"])[:, 0]


if __name__ == "__main__":
    key = jax.random.PRNGKey(0)
    k_ps, k_tf, k_params = jax.random.split(key, 3)

    B, T, F_PLAYER, F_TEAM = 12, 8, 12, 16
    player_stats = jax.random.normal(k_ps, (B, T, F_PLAYER), jnp.float32)
    team_features = jax.random.normal(k_tf, (B, F_TEAM), jnp.float32)
    params = init_params(k_params, n_player_features=F_PLAYER,
                         n_team_features=F_TEAM)

    # block_b=8 -> B padded to 16, grid=(2,) exercises the parallel batch grid.
    out = hybrid_lstm_nba_forward(player_stats, team_features, params, block_b=8)
    out = jax.block_until_ready(out)
    assert out.shape == (B,), out.shape

    ref = jax.block_until_ready(_reference_forward(player_stats, team_features, params))
    # bf16 MXU operands (vs f32 reference) -> loosened tolerance.
    assert jnp.max(jnp.abs(out - ref)) < 1.5e-1, (out, ref)

    print("KERNEL_OK")
</pallas_src>

<mosaic_0001>
module attributes {stable_mosaic.version = 11 : i64} {
  func.func @_hybrid_kernel(%arg0: i32, %arg1: memref<8x8x12xbf16, #tpu.memory_space<vmem>>, %arg2: memref<8x16xbf16, #tpu.memory_space<vmem>>, %arg3: memref<12x256xbf16, #tpu.memory_space<vmem>>, %arg4: memref<64x256xbf16, #tpu.memory_space<vmem>>, %arg5: memref<1x256xf32, #tpu.memory_space<vmem>>, %arg6: memref<64x128xbf16, #tpu.memory_space<vmem>>, %arg7: memref<1x128xf32, #tpu.memory_space<vmem>>, %arg8: memref<16x128xbf16, #tpu.memory_space<vmem>>, %arg9: memref<1x128xf32, #tpu.memory_space<vmem>>, %arg10: memref<1x128xf32, #tpu.memory_space<vmem>>, %arg11: memref<1x128xf32, #tpu.memory_space<vmem>>, %arg12: memref<128x128xbf16, #tpu.memory_space<vmem>>, %arg13: memref<128x128xbf16, #tpu.memory_space<vmem>>, %arg14: memref<1x128xf32, #tpu.memory_space<vmem>>, %arg15: memref<1x128xf32, #tpu.memory_space<vmem>>, %arg16: memref<1x128xf32, #tpu.memory_space<vmem>>, %arg17: memref<128x128xbf16, #tpu.memory_space<vmem>>, %arg18: memref<1x128xf32, #tpu.memory_space<vmem>>, %arg19: memref<8x128xf32, #tpu.memory_space<vmem>>) attributes {dimension_semantics = [#tpu.dimension_semantics<parallel>], iteration_bounds = array<i64: 2>, scalar_prefetch = 0 : i64, scratch_operands = 0 : i64, tpu.core_type = #tpu.core_type<tc>, window_params = [{transform_indices = @transform_0, window_bounds = array<i64: 8, 8, 12>}, {transform_indices = @transform_1, window_bounds = array<i64: 8, 16>}, {pipeline_mode = #tpu.pipeline_mode<synchronous>, transform_indices = @transform_2, window_bounds = array<i64: 12, 256>}, {pipeline_mode = #tpu.pipeline_mode<synchronous>, transform_indices = @transform_3, window_bounds = array<i64: 64, 256>}, {pipeline_mode = #tpu.pipeline_mode<synchronous>, transform_indices = @transform_4, window_bounds = array<i64: 1, 256>}, {pipeline_mode = #tpu.pipeline_mode<synchronous>, transform_indices = @transform_5, window_bounds = array<i64: 64, 128>}, {pipeline_mode = #tpu.pipeline_mode<synchronous>, transform_indices = @transform_6, window_bounds = array<i64: 1, 128>}, {pipeline_mode = #tpu.pipeline_mode<synchronous>, transform_indices = @transform_7, window_bounds = array<i64: 16, 128>}, {pipeline_mode = #tpu.pipeline_mode<synchronous>, transform_indices = @transform_8, window_bounds = array<i64: 1, 128>}, {pipeline_mode = #tpu.pipeline_mode<synchronous>, transform_indices = @transform_9, window_bounds = array<i64: 1, 128>}, {pipeline_mode = #tpu.pipeline_mode<synchronous>, transform_indices = @transform_10, window_bounds = array<i64: 1, 128>}, {pipeline_mode = #tpu.pipeline_mode<synchronous>, transform_indices = @transform_11, window_bounds = array<i64: 128, 128>}, {pipeline_mode = #tpu.pipeline_mode<synchronous>, transform_indices = @transform_12, window_bounds = array<i64: 128, 128>}, {pipeline_mode = #tpu.pipeline_mode<synchronous>, transform_indices = @transform_13, window_bounds = array<i64: 1, 128>}, {pipeline_mode = #tpu.pipeline_mode<synchronous>, transform_indices = @transform_14, window_bounds = array<i64: 1, 128>}, {pipeline_mode = #tpu.pipeline_mode<synchronous>, transform_indices = @transform_15, window_bounds = array<i64: 1, 128>}, {pipeline_mode = #tpu.pipeline_mode<synchronous>, transform_indices = @transform_16, window_bounds = array<i64: 128, 128>}, {pipeline_mode = #tpu.pipeline_mode<synchronous>, transform_indices = @transform_17, window_bounds = array<i64: 1, 128>}, {transform_indices = @transform_18, window_bounds = array<i64: 8, 128>}]} {
    %c0 = arith.constant 0 : index
    %c0_0 = arith.constant 0 : index
    %0 = vector.load %arg4[%c0, %c0_0] : memref<64x256xbf16, #tpu.memory_space<vmem>>, vector<64x256xbf16>
    %c0_1 = arith.constant 0 : index
    %c0_2 = arith.constant 0 : index
    %c0_3 = arith.constant 0 : index
    %1 = vector.load %arg1[%c0_1, %c0_2, %c0_3] : memref<8x8x12xbf16, #tpu.memory_space<vmem>>, vector<8x8x12xbf16>
    %2 = vector.shape_cast %1 : vector<8x8x12xbf16> to vector<64x12xbf16>
    %c0_4 = arith.constant 0 : index
    %c0_5 = arith.constant 0 : index
    %3 = vector.load %arg3[%c0_4, %c0_5] : memref<12x256xbf16, #tpu.memory_space<vmem>>, vector<12x256xbf16>
    %cst = arith.constant dense<0.000000e+00> : vector<64x256xf32>
    %4 = tpu.matmul %2, %3, %cst {dimension_numbers = #tpu.dot_dimension_numbers<[1], [0], [0], [1], [0, 0, 1, 1], [], []>} : vector<64x12xbf16>, vector<12x256xbf16>, vector<64x256xf32> -> vector<64x256xf32>
    %c0_6 = arith.constant 0 : index
    %c0_7 = arith.constant 0 : index
    %5 = vector.load %arg5[%c0_6, %c0_7] : memref<1x256xf32, #tpu.memory_space<vmem>>, vector<1x256xf32>
    %6 = vector.broadcast %5 : vector<1x256xf32> to vector<64x256xf32>
    %7 = arith.addf %4, %6 : vector<64x256xf32>
    %cst_8 = arith.constant 0.000000e+00 : f32
    %8 = vector.broadcast %cst_8 : f32 to vector<8x64xf32>
    %cst_9 = arith.constant 0.000000e+00 : f32
    %9 = vector.broadcast %cst_9 : f32 to vector<8x64xf32>
    %10 = vector.extract_strided_slice %7 {offsets = [0, 0], sizes = [8, 256], strides = [1, 1]} : vector<64x256xf32> to vector<8x256xf32>
    %11 = arith.truncf %8 : vector<8x64xf32> to vector<8x64xbf16>
    %cst_10 = arith.constant dense<0.000000e+00> : vector<8x256xf32>
    %12 = tpu.matmul %11, %0, %cst_10 {dimension_numbers = #tpu.dot_dimension_numbers<[1], [0], [0], [1], [0, 0, 1, 1], [], []>} : vector<8x64xbf16>, vector<64x256xbf16>, vector<8x256xf32> -> vector<8x256xf32>
    %13 = arith.addf %10, %12 : vector<8x256xf32>
    %14 = vector.extract_strided_slice %13 {offsets = [0, 0], sizes = [8, 192], strides = [1, 1]} : vector<8x256xf32> to vector<8x192xf32>
    %15 = arith.negf %14 : vector<8x192xf32>
    %16 = math.exp %15 : vector<8x192xf32>
    %cst_11 = arith.constant 1.000000e+00 : f32
    %17 = vector.broadcast %cst_11 : f32 to vector<8x192xf32>
    %18 = arith.addf %17, %16 : vector<8x192xf32>
    %19 = arith.divf %17, %18 : vector<8x192xf32>
    %20 = vector.extract_strided_slice %13 {offsets = [0, 192], sizes = [8, 64], strides = [1, 1]} : vector<8x256xf32> to vector<8x64xf32>
    %21 = math.tanh %20 : vector<8x64xf32>
    %22 = vector.extract_strided_slice %19 {offsets = [0, 0], sizes = [8, 64], strides = [1, 1]} : vector<8x192xf32> to vector<8x64xf32>
    %23 = vector.extract_strided_slice %19 {offsets = [0, 64], sizes = [8, 64], strides = [1, 1]} : vector<8x192xf32> to vector<8x64xf32>
    %24 = vector.extract_strided_slice %19 {offsets = [0, 128], sizes = [8, 64], strides = [1, 1]} : vector<8x192xf32> to vector<8x64xf32>
    %25 = arith.mulf %23, %9 : vector<8x64xf32>
    %26 = arith.mulf %22, %21 : vector<8x64xf32>
    %27 = arith.addf %25, %26 : vector<8x64xf32>
    %28 = math.tanh %27 : vector<8x64xf32>
    %29 = arith.mulf %24, %28 : vector<8x64xf32>
    %30 = vector.extract_strided_slice %7 {offsets = [8, 0], sizes = [8, 256], strides = [1, 1]} : vector<64x256xf32> to vector<8x256xf32>
    %31 = arith.truncf %29 : vector<8x64xf32> to vector<8x64xbf16>
    %cst_12 = arith.constant dense<0.000000e+00> : vector<8x256xf32>
    %32 = tpu.matmul %31, %0, %cst_12 {dimension_numbers = #tpu.dot_dimension_numbers<[1], [0], [0], [1], [0, 0, 1, 1], [], []>} : vector<8x64xbf16>, vector<64x256xbf16>, vector<8x256xf32> -> vector<8x256xf32>
    %33 = arith.addf %30, %32 : vector<8x256xf32>
    %34 = vector.extract_strided_slice %33 {offsets = [0, 0], sizes = [8, 192], strides = [1, 1]} : vector<8x256xf32> to vector<8x192xf32>
    %35 = arith.negf %34 : vector<8x192xf32>
    %36 = math.exp %35 : vector<8x192xf32>
    %cst_13 = arith.constant 1.000000e+00 : f32
    %37 = vector.broadcast %cst_13 : f32 to vector<8x192xf32>
    %38 = arith.addf %37, %36 : vector<8x192xf32>
    %39 = arith.divf %37, %38 : vector<8x192xf32>
    %40 = vector.extract_strided_slice %33 {offsets = [0, 192], sizes = [8, 64], strides = [1, 1]} : vector<8x256xf32> to vector<8x64xf32>
    %41 = math.tanh %40 : vector<8x64xf32>
    %42 = vector.extract_strided_slice %39 {offsets = [0, 0], sizes = [8, 64], strides = [1, 1]} : vector<8x192xf32> to vector<8x64xf32>
    %43 = vector.extract_strided_slice %39 {offsets = [0, 64], sizes = [8, 64], strides = [1, 1]} : vector<8x192xf32> to vector<8x64xf32>
    %44 = vector.extract_strided_slice %39 {offsets = [0, 128], sizes = [8, 64], strides = [1, 1]} : vector<8x192xf32> to vector<8x64xf32>
    %45 = arith.mulf %43, %27 : vector<8x64xf32>
    %46 = arith.mulf %42, %41 : vector<8x64xf32>
    %47 = arith.addf %45, %46 : vector<8x64xf32>
    %48 = math.tanh %47 : vector<8x64xf32>
    %49 = arith.mulf %44, %48 : vector<8x64xf32>
    %50 = vector.extract_strided_slice %7 {offsets = [16, 0], sizes = [8, 256], strides = [1, 1]} : vector<64x256xf32> to vector<8x256xf32>
    %51 = arith.truncf %49 : vector<8x64xf32> to vector<8x64xbf16>
    %cst_14 = arith.constant dense<0.000000e+00> : vector<8x256xf32>
    %52 = tpu.matmul %51, %0, %cst_14 {dimension_numbers = #tpu.dot_dimension_numbers<[1], [0], [0], [1], [0, 0, 1, 1], [], []>} : vector<8x64xbf16>, vector<64x256xbf16>, vector<8x256xf32> -> vector<8x256xf32>
    %53 = arith.addf %50, %52 : vector<8x256xf32>
    %54 = vector.extract_strided_slice %53 {offsets = [0, 0], sizes = [8, 192], strides = [1, 1]} : vector<8x256xf32> to vector<8x192xf32>
    %55 = arith.negf %54 : vector<8x192xf32>
    %56 = math.exp %55 : vector<8x192xf32>
    %cst_15 = arith.constant 1.000000e+00 : f32
    %57 = vector.broadcast %cst_15 : f32 to vector<8x192xf32>
    %58 = arith.addf %57, %56 : vector<8x192xf32>
    %59 = arith.divf %57, %58 : vector<8x192xf32>
    %60 = vector.extract_strided_slice %53 {offsets = [0, 192], sizes = [8, 64], strides = [1, 1]} : vector<8x256xf32> to vector<8x64xf32>
    %61 = math.tanh %60 : vector<8x64xf32>
    %62 = vector.extract_strided_slice %59 {offsets = [0, 0], sizes = [8, 64], strides = [1, 1]} : vector<8x192xf32> to vector<8x64xf32>
    %63 = vector.extract_strided_slice %59 {offsets = [0, 64], sizes = [8, 64], strides = [1, 1]} : vector<8x192xf32> to vector<8x64xf32>
    %64 = vector.extract_strided_slice %59 {offsets = [0, 128], sizes = [8, 64], strides = [1, 1]} : vector<8x192xf32> to vector<8x64xf32>
    %65 = arith.mulf %63, %47 : vector<8x64xf32>
    %66 = arith.mulf %62, %61 : vector<8x64xf32>
    %67 = arith.addf %65, %66 : vector<8x64xf32>
    %68 = math.tanh %67 : vector<8x64xf32>
    %69 = arith.mulf %64, %68 : vector<8x64xf32>
    %70 = vector.extract_strided_slice %7 {offsets = [24, 0], sizes = [8, 256], strides = [1, 1]} : vector<64x256xf32> to vector<8x256xf32>
    %71 = arith.truncf %69 : vector<8x64xf32> to vector<8x64xbf16>
    %cst_16 = arith.constant dense<0.000000e+00> : vector<8x256xf32>
    %72 = tpu.matmul %71, %0, %cst_16 {dimension_numbers = #tpu.dot_dimension_numbers<[1], [0], [0], [1], [0, 0, 1, 1], [], []>} : vector<8x64xbf16>, vector<64x256xbf16>, vector<8x256xf32> -> vector<8x256xf32>
    %73 = arith.addf %70, %72 : vector<8x256xf32>
    %74 = vector.extract_strided_slice %73 {offsets = [0, 0], sizes = [8, 192], strides = [1, 1]} : vector<8x256xf32> to vector<8x192xf32>
    %75 = arith.negf %74 : vector<8x192xf32>
    %76 = math.exp %75 : vector<8x192xf32>
    %cst_17 = arith.constant 1.000000e+00 : f32
    %77 = vector.broadcast %cst_17 : f32 to vector<8x192xf32>
    %78 = arith.addf %77, %76 : vector<8x192xf32>
    %79 = arith.divf %77, %78 : vector<8x192xf32>
    %80 = vector.extract_strided_slice %73 {offsets = [0, 192], sizes = [8, 64], strides = [1, 1]} : vector<8x256xf32> to vector<8x64xf32>
    %81 = math.tanh %80 : vector<8x64xf32>
    %82 = vector.extract_strided_slice %79 {offsets = [0, 0], sizes = [8, 64], strides = [1, 1]} : vector<8x192xf32> to vector<8x64xf32>
    %83 = vector.extract_strided_slice %79 {offsets = [0, 64], sizes = [8, 64], strides = [1, 1]} : vector<8x192xf32> to vector<8x64xf32>
    %84 = vector.extract_strided_slice %79 {offsets = [0, 128], sizes = [8, 64], strides = [1, 1]} : vector<8x192xf32> to vector<8x64xf32>
    %85 = arith.mulf %83, %67 : vector<8x64xf32>
    %86 = arith.mulf %82, %81 : vector<8x64xf32>
    %87 = arith.addf %85, %86 : vector<8x64xf32>
    %88 = math.tanh %87 : vector<8x64xf32>
    %89 = arith.mulf %84, %88 : vector<8x64xf32>
    %90 = vector.extract_strided_slice %7 {offsets = [32, 0], sizes = [8, 256], strides = [1, 1]} : vector<64x256xf32> to vector<8x256xf32>
    %91 = arith.truncf %89 : vector<8x64xf32> to vector<8x64xbf16>
    %cst_18 = arith.constant dense<0.000000e+00> : vector<8x256xf32>
    %92 = tpu.matmul %91, %0, %cst_18 {dimension_numbers = #tpu.dot_dimension_numbers<[1], [0], [0], [1], [0, 0, 1, 1], [], []>} : vector<8x64xbf16>, vector<64x256xbf16>, vector<8x256xf32> -> vector<8x256xf32>
    %93 = arith.addf %90, %92 : vector<8x256xf32>
    %94 = vector.extract_strided_slice %93 {offsets = [0, 0], sizes = [8, 192], strides = [1, 1]} : vector<8x256xf32> to vector<8x192xf32>
    %95 = arith.negf %94 : vector<8x192xf32>
    %96 = math.exp %95 : vector<8x192xf32>
    %cst_19 = arith.constant 1.000000e+00 : f32
    %97 = vector.broadcast %cst_19 : f32 to vector<8x192xf32>
    %98 = arith.addf %97, %96 : vector<8x192xf32>
    %99 = arith.divf %97, %98 : vector<8x192xf32>
    %100 = vector.extract_strided_slice %93 {offsets = [0, 192], sizes = [8, 64], strides = [1, 1]} : vector<8x256xf32> to vector<8x64xf32>
    %101 = math.tanh %100 : vector<8x64xf32>
    %102 = vector.extract_strided_slice %99 {offsets = [0, 0], sizes = [8, 64], strides = [1, 1]} : vector<8x192xf32> to vector<8x64xf32>
    %103 = vector.extract_strided_slice %99 {offsets = [0, 64], sizes = [8, 64], strides = [1, 1]} : vector<8x192xf32> to vector<8x64xf32>
    %104 = vector.extract_strided_slice %99 {offsets = [0, 128], sizes = [8, 64], strides = [1, 1]} : vector<8x192xf32> to vector<8x64xf32>
    %105 = arith.mulf %103, %87 : vector<8x64xf32>
    %106 = arith.mulf %102, %101 : vector<8x64xf32>
    %107 = arith.addf %105, %106 : vector<8x64xf32>
    %108 = math.tanh %107 : vector<8x64xf32>
    %109 = arith.mulf %104, %108 : vector<8x64xf32>
    %110 = vector.extract_strided_slice %7 {offsets = [40, 0], sizes = [8, 256], strides = [1, 1]} : vector<64x256xf32> to vector<8x256xf32>
    %111 = arith.truncf %109 : vector<8x64xf32> to vector<8x64xbf16>
    %cst_20 = arith.constant dense<0.000000e+00> : vector<8x256xf32>
    %112 = tpu.matmul %111, %0, %cst_20 {dimension_numbers = #tpu.dot_dimension_numbers<[1], [0], [0], [1], [0, 0, 1, 1], [], []>} : vector<8x64xbf16>, vector<64x256xbf16>, vector<8x256xf32> -> vector<8x256xf32>
    %113 = arith.addf %110, %112 : vector<8x256xf32>
    %114 = vector.extract_strided_slice %113 {offsets = [0, 0], sizes = [8, 192], strides = [1, 1]} : vector<8x256xf32> to vector<8x192xf32>
    %115 = arith.negf %114 : vector<8x192xf32>
    %116 = math.exp %115 : vector<8x192xf32>
    %cst_21 = arith.constant 1.000000e+00 : f32
    %117 = vector.broadcast %cst_21 : f32 to vector<8x192xf32>
    %118 = arith.addf %117, %116 : vector<8x192xf32>
    %119 = arith.divf %117, %118 : vector<8x192xf32>
    %120 = vector.extract_strided_slice %113 {offsets = [0, 192], sizes = [8, 64], strides = [1, 1]} : vector<8x256xf32> to vector<8x64xf32>
    %121 = math.tanh %120 : vector<8x64xf32>
    %122 = vector.extract_strided_slice %119 {offsets = [0, 0], sizes = [8, 64], strides = [1, 1]} : vector<8x192xf32> to vector<8x64xf32>
    %123 = vector.extract_strided_slice %119 {offsets = [0, 64], sizes = [8, 64], strides = [1, 1]} : vector<8x192xf32> to vector<8x64xf32>
    %124 = vector.extract_strided_slice %119 {offsets = [0, 128], sizes = [8, 64], strides = [1, 1]} : vector<8x192xf32> to vector<8x64xf32>
    %125 = arith.mulf %123, %107 : vector<8x64xf32>
    %126 = arith.mulf %122, %121 : vector<8x64xf32>
    %127 = arith.addf %125, %126 : vector<8x64xf32>
    %128 = math.tanh %127 : vector<8x64xf32>
    %129 = arith.mulf %124, %128 : vector<8x64xf32>
    %130 = vector.extract_strided_slice %7 {offsets = [48, 0], sizes = [8, 256], strides = [1, 1]} : vector<64x256xf32> to vector<8x256xf32>
    %131 = arith.truncf %129 : vector<8x64xf32> to vector<8x64xbf16>
    %cst_22 = arith.constant dense<0.000000e+00> : vector<8x256xf32>
    %132 = tpu.matmul %131, %0, %cst_22 {dimension_numbers = #tpu.dot_dimension_numbers<[1], [0], [0], [1], [0, 0, 1, 1], [], []>} : vector<8x64xbf16>, vector<64x256xbf16>, vector<8x256xf32> -> vector<8x256xf32>
    %133 = arith.addf %130, %132 : vector<8x256xf32>
    %134 = vector.extract_strided_slice %133 {offsets = [0, 0], sizes = [8, 192], strides = [1, 1]} : vector<8x256xf32> to vector<8x192xf32>
    %135 = arith.negf %134 : vector<8x192xf32>
    %136 = math.exp %135 : vector<8x192xf32>
    %cst_23 = arith.constant 1.000000e+00 : f32
    %137 = vector.broadcast %cst_23 : f32 to vector<8x192xf32>
    %138 = arith.addf %137, %136 : vector<8x192xf32>
    %139 = arith.divf %137, %138 : vector<8x192xf32>
    %140 = vector.extract_strided_slice %133 {offsets = [0, 192], sizes = [8, 64], strides = [1, 1]} : vector<8x256xf32> to vector<8x64xf32>
    %141 = math.tanh %140 : vector<8x64xf32>
    %142 = vector.extract_strided_slice %139 {offsets = [0, 0], sizes = [8, 64], strides = [1, 1]} : vector<8x192xf32> to vector<8x64xf32>
    %143 = vector.extract_strided_slice %139 {offsets = [0, 64], sizes = [8, 64], strides = [1, 1]} : vector<8x192xf32> to vector<8x64xf32>
    %144 = vector.extract_strided_slice %139 {offsets = [0, 128], sizes = [8, 64], strides = [1, 1]} : vector<8x192xf32> to vector<8x64xf32>
    %145 = arith.mulf %143, %127 : vector<8x64xf32>
    %146 = arith.mulf %142, %141 : vector<8x64xf32>
    %147 = arith.addf %145, %146 : vector<8x64xf32>
    %148 = math.tanh %147 : vector<8x64xf32>
    %149 = arith.mulf %144, %148 : vector<8x64xf32>
    %150 = vector.extract_strided_slice %7 {offsets = [56, 0], sizes = [8, 256], strides = [1, 1]} : vector<64x256xf32> to vector<8x256xf32>
    %151 = arith.truncf %149 : vector<8x64xf32> to vector<8x64xbf16>
    %cst_24 = arith.constant dense<0.000000e+00> : vector<8x256xf32>
    %152 = tpu.matmul %151, %0, %cst_24 {dimension_numbers = #tpu.dot_dimension_numbers<[1], [0], [0], [1], [0, 0, 1, 1], [], []>} : vector<8x64xbf16>, vector<64x256xbf16>, vector<8x256xf32> -> vector<8x256xf32>
    %153 = arith.addf %150, %152 : vector<8x256xf32>
    %154 = vector.extract_strided_slice %153 {offsets = [0, 0], sizes = [8, 192], strides = [1, 1]} : vector<8x256xf32> to vector<8x192xf32>
    %155 = arith.negf %154 : vector<8x192xf32>
    %156 = math.exp %155 : vector<8x192xf32>
    %cst_25 = arith.constant 1.000000e+00 : f32
    %157 = vector.broadcast %cst_25 : f32 to vector<8x192xf32>
    %158 = arith.addf %157, %156 : vector<8x192xf32>
    %159 = arith.divf %157, %158 : vector<8x192xf32>
    %160 = vector.extract_strided_slice %153 {offsets = [0, 192], sizes = [8, 64], strides = [1, 1]} : vector<8x256xf32> to vector<8x64xf32>
    %161 = math.tanh %160 : vector<8x64xf32>
    %162 = vector.extract_strided_slice %159 {offsets = [0, 0], sizes = [8, 64], strides = [1, 1]} : vector<8x192xf32> to vector<8x64xf32>
    %163 = vector.extract_strided_slice %159 {offsets = [0, 64], sizes = [8, 64], strides = [1, 1]} : vector<8x192xf32> to vector<8x64xf32>
    %164 = vector.extract_strided_slice %159 {offsets = [0, 128], sizes = [8, 64], strides = [1, 1]} : vector<8x192xf32> to vector<8x64xf32>
    %165 = arith.mulf %163, %147 : vector<8x64xf32>
    %166 = arith.mulf %162, %161 : vector<8x64xf32>
    %167 = arith.addf %165, %166 : vector<8x64xf32>
    %168 = math.tanh %167 : vector<8x64xf32>
    %169 = arith.mulf %164, %168 : vector<8x64xf32>
    %170 = arith.truncf %169 : vector<8x64xf32> to vector<8x64xbf16>
    %c0_26 = arith.constant 0 : index
    %c0_27 = arith.constant 0 : index
    %171 = vector.load %arg6[%c0_26, %c0_27] : memref<64x128xbf16, #tpu.memory_space<vmem>>, vector<64x128xbf16>
    %cst_28 = arith.constant dense<0.000000e+00> : vector<8x128xf32>
    %172 = tpu.matmul %170, %171, %cst_28 {dimension_numbers = #tpu.dot_dimension_numbers<[1], [0], [0], [1], [0, 0, 1, 1], [], []>} : vector<8x64xbf16>, vector<64x128xbf16>, vector<8x128xf32> -> vector<8x128xf32>
    %c0_29 = arith.constant 0 : index
    %c0_30 = arith.constant 0 : index
    %173 = vector.load %arg7[%c0_29, %c0_30] : memref<1x128xf32, #tpu.memory_space<vmem>>, vector<1x128xf32>
    %174 = vector.broadcast %173 : vector<1x128xf32> to vector<8x128xf32>
    %175 = arith.addf %172, %174 : vector<8x128xf32>
    %cst_31 = arith.constant 0.000000e+00 : f32
    %176 = vector.broadcast %cst_31 : f32 to vector<8x128xf32>
    %177 = arith.maximumf %175, %176 : vector<8x128xf32>
    %c0_32 = arith.constant 0 : index
    %c0_33 = arith.constant 0 : index
    %178 = vector.load %arg2[%c0_32, %c0_33] : memref<8x16xbf16, #tpu.memory_space<vmem>>, vector<8x16xbf16>
    %c0_34 = arith.constant 0 : index
    %c0_35 = arith.constant 0 : index
    %179 = vector.load %arg8[%c0_34, %c0_35] : memref<16x128xbf16, #tpu.memory_space<vmem>>, vector<16x128xbf16>
    %cst_36 = arith.constant dense<0.000000e+00> : vector<8x128xf32>
    %180 = tpu.matmul %178, %179, %cst_36 {dimension_numbers = #tpu.dot_dimension_numbers<[1], [0], [0], [1], [0, 0, 1, 1], [], []>} : vector<8x16xbf16>, vector<16x128xbf16>, vector<8x128xf32> -> vector<8x128xf32>
    %c0_37 = arith.constant 0 : index
    %c0_38 = arith.constant 0 : index
    %181 = vector.load %arg9[%c0_37, %c0_38] : memref<1x128xf32, #tpu.memory_space<vmem>>, vector<1x128xf32>
    %182 = vector.broadcast %181 : vector<1x128xf32> to vector<8x128xf32>
    %183 = arith.addf %180, %182 : vector<8x128xf32>
    %c0_39 = arith.constant 0 : index
    %c0_40 = arith.constant 0 : index
    %184 = vector.load %arg10[%c0_39, %c0_40] : memref<1x128xf32, #tpu.memory_space<vmem>>, vector<1x128xf32>
    %185 = vector.broadcast %184 : vector<1x128xf32> to vector<8x128xf32>
    %186 = arith.mulf %183, %185 : vector<8x128xf32>
    %c0_41 = arith.constant 0 : index
    %c0_42 = arith.constant 0 : index
    %187 = vector.load %arg11[%c0_41, %c0_42] : memref<1x128xf32, #tpu.memory_space<vmem>>, vector<1x128xf32>
    %188 = vector.broadcast %187 : vector<1x128xf32> to vector<8x128xf32>
    %189 = arith.addf %186, %188 : vector<8x128xf32>
    %cst_43 = arith.constant 0.000000e+00 : f32
    %190 = vector.broadcast %cst_43 : f32 to vector<8x128xf32>
    %191 = arith.maximumf %189, %190 : vector<8x128xf32>
    %192 = arith.truncf %177 : vector<8x128xf32> to vector<8x128xbf16>
    %c0_44 = arith.constant 0 : index
    %c0_45 = arith.constant 0 : index
    %193 = vector.load %arg12[%c0_44, %c0_45] : memref<128x128xbf16, #tpu.memory_space<vmem>>, vector<128x128xbf16>
    %cst_46 = arith.constant dense<0.000000e+00> : vector<8x128xf32>
    %194 = tpu.matmul %192, %193, %cst_46 {dimension_numbers = #tpu.dot_dimension_numbers<[1], [0], [0], [1], [0, 0, 1, 1], [], []>} : vector<8x128xbf16>, vector<128x128xbf16>, vector<8x128xf32> -> vector<8x128xf32>
    %195 = arith.truncf %191 : vector<8x128xf32> to vector<8x128xbf16>
    %c0_47 = arith.constant 0 : index
    %c0_48 = arith.constant 0 : index
    %196 = vector.load %arg13[%c0_47, %c0_48] : memref<128x128xbf16, #tpu.memory_space<vmem>>, vector<128x128xbf16>
    %cst_49 = arith.constant dense<0.000000e+00> : vector<8x128xf32>
    %197 = tpu.matmul %195, %196, %cst_49 {dimension_numbers = #tpu.dot_dimension_numbers<[1], [0], [0], [1], [0, 0, 1, 1], [], []>} : vector<8x128xbf16>, vector<128x128xbf16>, vector<8x128xf32> -> vector<8x128xf32>
    %198 = arith.addf %194, %197 : vector<8x128xf32>
    %c0_50 = arith.constant 0 : index
    %c0_51 = arith.constant 0 : index
    %199 = vector.load %arg14[%c0_50, %c0_51] : memref<1x128xf32, #tpu.memory_space<vmem>>, vector<1x128xf32>
    %200 = vector.broadcast %199 : vector<1x128xf32> to vector<8x128xf32>
    %201 = arith.addf %198, %200 : vector<8x128xf32>
    %c0_52 = arith.constant 0 : index
    %c0_53 = arith.constant 0 : index
    %202 = vector.load %arg15[%c0_52, %c0_53] : memref<1x128xf32, #tpu.memory_space<vmem>>, vector<1x128xf32>
    %203 = vector.broadcast %202 : vector<1x128xf32> to vector<8x128xf32>
    %204 = arith.mulf %201, %203 : vector<8x128xf32>
    %c0_54 = arith.constant 0 : index
    %c0_55 = arith.constant 0 : index
    %205 = vector.load %arg16[%c0_54, %c0_55] : memref<1x128xf32, #tpu.memory_space<vmem>>, vector<1x128xf32>
    %206 = vector.broadcast %205 : vector<1x128xf32> to vector<8x128xf32>
    %207 = arith.addf %204, %206 : vector<8x128xf32>
    %cst_56 = arith.constant 0.000000e+00 : f32
    %208 = vector.broadcast %cst_56 : f32 to vector<8x128xf32>
    %209 = arith.maximumf %207, %208 : vector<8x128xf32>
    %210 = arith.truncf %209 : vector<8x128xf32> to vector<8x128xbf16>
    %c0_57 = arith.constant 0 : index
    %c0_58 = arith.constant 0 : index
    %211 = vector.load %arg17[%c0_57, %c0_58] : memref<128x128xbf16, #tpu.memory_space<vmem>>, vector<128x128xbf16>
    %cst_59 = arith.constant dense<0.000000e+00> : vector<8x128xf32>
    %212 = tpu.matmul %210, %211, %cst_59 {dimension_numbers = #tpu.dot_dimension_numbers<[1], [0], [0], [1], [0, 0, 1, 1], [], []>} : vector<8x128xbf16>, vector<128x128xbf16>, vector<8x128xf32> -> vector<8x128xf32>
    %c0_60 = arith.constant 0 : index
    %c0_61 = arith.constant 0 : index
    %213 = vector.load %arg18[%c0_60, %c0_61] : memref<1x128xf32, #tpu.memory_space<vmem>>, vector<1x128xf32>
    %214 = vector.broadcast %213 : vector<1x128xf32> to vector<8x128xf32>
    %215 = arith.addf %212, %214 : vector<8x128xf32>
    %c0_62 = arith.constant 0 : index
    %c0_63 = arith.constant 0 : index
    %216 = vector.load %arg19[%c0_62, %c0_63] : memref<8x128xf32, #tpu.memory_space<vmem>>, vector<8x128xf32>
    tpu.vector_store %arg19[%c0_62, %c0_63], %215 {strides = array<i32>} : memref<8x128xf32, #tpu.memory_space<vmem>>, vector<8x128xf32>,
    return
  }
  func.func @transform_0(%arg0: i32) -> (i32, i32, i32) {
    %c0_i32 = arith.constant 0 : i32
    %c0_i32_0 = arith.constant 0 : i32
    %c0_i32_1 = arith.constant 0 : i32
    return %c0_i32, %arg0, %c0_i32_0 : i32, i32, i32
  }
  func.func @transform_1(%arg0: i32) -> (i32, i32) {
    %c0_i32 = arith.constant 0 : i32
    %c0_i32_0 = arith.constant 0 : i32
    return %arg0, %c0_i32 : i32, i32
  }
  func.func @transform_2(%arg0: i32) -> (i32, i32) {
    %c0_i32 = arith.constant 0 : i32
    %c0_i32_0 = arith.constant 0 : i32
    %c0_i32_1 = arith.constant 0 : i32
    return %c0_i32, %c0_i32_0 : i32, i32
  }
  func.func @transform_3(%arg0: i32) -> (i32, i32) {
    %c0_i32 = arith.constant 0 : i32
    %c0_i32_0 = arith.constant 0 : i32
    %c0_i32_1 = arith.constant 0 : i32
    return %c0_i32, %c0_i32_0 : i32, i32
  }
  func.func @transform_4(%arg0: i32) -> (i32, i32) {
    %c0_i32 = arith.constant 0 : i32
    %c0_i32_0 = arith.constant 0 : i32
    %c0_i32_1 = arith.constant 0 : i32
    return %c0_i32, %c0_i32_0 : i32, i32
  }
  func.func @transform_5(%arg0: i32) -> (i32, i32) {
    %c0_i32 = arith.constant 0 : i32
    %c0_i32_0 = arith.constant 0 : i32
    %c0_i32_1 = arith.constant 0 : i32
    return %c0_i32, %c0_i32_0 : i32, i32
  }
  func.func @transform_6(%arg0: i32) -> (i32, i32) {
    %c0_i32 = arith.constant 0 : i32
    %c0_i32_0 = arith.constant 0 : i32
    %c0_i32_1 = arith.constant 0 : i32
    return %c0_i32, %c0_i32_0 : i32, i32
  }
  func.func @transform_7(%arg0: i32) -> (i32, i32) {
    %c0_i32 = arith.constant 0 : i32
    %c0_i32_0 = arith.constant 0 : i32
    %c0_i32_1 = arith.constant 0 : i32
    return %c0_i32, %c0_i32_0 : i32, i32
  }
  func.func @transform_8(%arg0: i32) -> (i32, i32) {
    %c0_i32 = arith.constant 0 : i32
    %c0_i32_0 = arith.constant 0 : i32
    %c0_i32_1 = arith.constant 0 : i32
    return %c0_i32, %c0_i32_0 : i32, i32
  }
  func.func @transform_9(%arg0: i32) -> (i32, i32) {
    %c0_i32 = arith.constant 0 : i32
    %c0_i32_0 = arith.constant 0 : i32
    %c0_i32_1 = arith.constant 0 : i32
    return %c0_i32, %c0_i32_0 : i32, i32
  }
  func.func @transform_10(%arg0: i32) -> (i32, i32) {
    %c0_i32 = arith.constant 0 : i32
    %c0_i32_0 = arith.constant 0 : i32
    %c0_i32_1 = arith.constant 0 : i32
    return %c0_i32, %c0_i32_0 : i32, i32
  }
  func.func @transform_11(%arg0: i32) -> (i32, i32) {
    %c0_i32 = arith.constant 0 : i32
    %c0_i32_0 = arith.constant 0 : i32
    %c0_i32_1 = arith.constant 0 : i32
    return %c0_i32, %c0_i32_0 : i32, i32
  }
  func.func @transform_12(%arg0: i32) -> (i32, i32) {
    %c0_i32 = arith.constant 0 : i32
    %c0_i32_0 = arith.constant 0 : i32
    %c0_i32_1 = arith.constant 0 : i32
    return %c0_i32, %c0_i32_0 : i32, i32
  }
  func.func @transform_13(%arg0: i32) -> (i32, i32) {
    %c0_i32 = arith.constant 0 : i32
    %c0_i32_0 = arith.constant 0 : i32
    %c0_i32_1 = arith.constant 0 : i32
    return %c0_i32, %c0_i32_0 : i32, i32
  }
  func.func @transform_14(%arg0: i32) -> (i32, i32) {
    %c0_i32 = arith.constant 0 : i32
    %c0_i32_0 = arith.constant 0 : i32
    %c0_i32_1 = arith.constant 0 : i32
    return %c0_i32, %c0_i32_0 : i32, i32
  }
  func.func @transform_15(%arg0: i32) -> (i32, i32) {
    %c0_i32 = arith.constant 0 : i32
    %c0_i32_0 = arith.constant 0 : i32
    %c0_i32_1 = arith.constant 0 : i32
    return %c0_i32, %c0_i32_0 : i32, i32
  }
  func.func @transform_16(%arg0: i32) -> (i32, i32) {
    %c0_i32 = arith.constant 0 : i32
    %c0_i32_0 = arith.constant 0 : i32
    %c0_i32_1 = arith.constant 0 : i32
    return %c0_i32, %c0_i32_0 : i32, i32
  }
  func.func @transform_17(%arg0: i32) -> (i32, i32) {
    %c0_i32 = arith.constant 0 : i32
    %c0_i32_0 = arith.constant 0 : i32
    %c0_i32_1 = arith.constant 0 : i32
    return %c0_i32, %c0_i32_0 : i32, i32
  }
  func.func @transform_18(%arg0: i32) -> (i32, i32) {
    %c0_i32 = arith.constant 0 : i32
    %c0_i32_0 = arith.constant 0 : i32
    return %arg0, %c0_i32 : i32, i32
  }
}

</mosaic_0001>

<bundles_post_ra>
// kernel: tpu_custom_call.1
= control target key start
LH: loop header
LB: loop body
LE: loop exit
PB: predicated region body
PF: predicated region fallthrough
CT: control target
= control target key end

     0   :  { %s3645_s0 = inlined_call_operand.vmem [shape: bf16[8,16,12], index: 0, kind: input, shape index: {}]   ;;  %s3646_s1 = inlined_call_operand.hbm [shape: bf16[16,16], index: 1, kind: input, shape index: {}]   ;;  %s3647_s2 = inlined_call_operand.hbm [shape: bf16[12,256], index: 2, kind: input, shape index: {}]   ;;  %s3648_s3 = inlined_call_operand.vmem [shape: bf16[64,256], index: 3, kind: input, shape index: {}]   ;;  %s3649_s4 = inlined_call_operand.vmem [shape: f32[1,256], index: 4, kind: input, shape index: {}]   ;;  %s3650_s5 = inlined_call_operand.hbm [shape: bf16[64,128], index: 5, kind: input, shape index: {}]   ;;  %s3651_s6 = inlined_call_operand.hbm [shape: f32[1,128], index: 6, kind: input, shape index: {}]   ;;  %s3652_s7 = inlined_call_operand.vmem [shape: bf16[16,128], index: 7, kind: input, shape index: {}]   ;;  %s3653_s8 = inlined_call_operand.vmem [shape: f32[1,128], index: 8, kind: input, shape index: {}]   ;;  %s3654_s9 = inlined_call_operand.vmem [shape: f32[1,128], index: 9, kind: input, shape index: {}]   ;;  %s3655_s10 = inlined_call_operand.vmem [shape: f32[1,128], index: 10, kind: input, shape index: {}]   ;;  %s3656_s11 = inlined_call_operand.vmem [shape: bf16[128,128], index: 11, kind: input, shape index: {}]   ;;  %s3657_s12 = inlined_call_operand.hbm [shape: bf16[128,128], index: 12, kind: input, shape index: {}]   ;;  %s3658_s13 = inlined_call_operand.vmem [shape: f32[1,128], index: 13, kind: input, shape index: {}]   ;;  %s3659_s14 = inlined_call_operand.vmem [shape: f32[1,128], index: 14, kind: input, shape index: {}]   ;;  %s3660_s15 = inlined_call_operand.vmem [shape: f32[1,128], index: 15, kind: input, shape index: {}]   ;;  %s3661_s16 = inlined_call_operand.hbm [shape: bf16[128,128], index: 16, kind: input, shape index: {}]   ;;  %s3662_s17 = inlined_call_operand.vmem [shape: f32[1,128], index: 17, kind: input, shape index: {}]   ;;  %s3663_s18 = inlined_call_operand.hbm [shape: f32[16,128], index: 18, kind: output, shape index: {}]  }
   0x1   :  { %3679 = sst [smem:[#allocation25_spill]] %s3645_s0 }
   0x2   :  { %3680 = sst [smem:[#allocation26_spill]] %s3646_s1 }
   0x3   :  { %3681 = sst [smem:[#allocation27_spill]] %s3647_s2 }
   0x4   :  { %3682 = sst [smem:[#allocation28_spill]] %s3651_s6 }
   0x5   :  { %3683 = sst [smem:[#allocation29_spill]] %s3653_s8 }
   0x6   :  { %3684 = sst [smem:[#allocation30_spill]] %s3654_s9 }
   0x7   :  { %3685 = sst [smem:[#allocation31_spill]] %s3655_s10 }
   0x8   :  { %3686 = sst [smem:[#allocation32_spill]] %s3658_s13 }
   0x9   :  { %3687 = sst [smem:[#allocation33_spill]] %s3659_s14 }
   0xa   :  { %3688 = sst [smem:[#allocation34_spill]] %s3660_s15 }
   0xb   :  { %3689 = sst [smem:[#allocation35_spill]] %s3662_s17 }
   0xc   :  { %3690 = sst [smem:[#allocation36_spill]] %s3663_s18 }
   0xd   :  { %23 = vsyncpa [#allocation4], 0 }
   0xe   :  { %25 = vsyncpa [#allocation4 + $0x1], 0 }
   0xf   :  { %26 = vsyncpa [#allocation7], 0 }
  0x10   :  { %27 = vsyncpa [#allocation10], 0 }
  0x11   :  { %28 = vsyncpa [#allocation13], 0 }
  0x12   :  { %29 = vsyncpa [#allocation5], 0 }
  0x13   :  { %31 = vsyncpa [#allocation5 + $0x1], 0  ;;  %s3040_s27 = smov 0   ;;  %s3042_s28 = smov 0  }
  0x14   :  { %s3044_s29 = smov 0   ;;  %s3046_s30 = smov 0  }
  0x15 LB: > { %3691 = sst [smem:[#allocation20_spill]] %s2916_s27  ;;  %s3061_s0 = sadd.s32 4294967295, %s2928_s30   ;;  %s2928_s30 = sphi %s3046_s30, %s3731_s30   ;;  %s2924_s29 = sphi %s3044_s29, %s3735_s29   ;;  %s2920_s28 = sphi %s3042_s28, %s3734_s28   ;;  %s2916_s27 = sphi %s3040_s27, %s3733_s27  }
  0x16   : > { %s2218_s19 = sadd.s32 4294967294, %s2928_s30   ;;  %s3065_s1 = sadd.s32 1, %s2928_s30  }
  0x17   : > { %3692 = sst [smem:[#allocation21_spill]] %s3065_s1  ;;  %s44_s20 = sadd.s32 1, %s2924_s29 }
  0x18   : > { %s41_s21 = ssub.s32 %s2928_s30, %s3065_s1  ;;  %p51_p0 = scmp.ne.s32.totalorder %s2924_s29, %s2920_s28 }
  0x19   : > { %p42_p1 = scmp.eq.s32.totalorder %s41_s21, 0  ;;  %p52_p2 = scmp.eq.s32.totalorder %s2928_s30, 0 }
  0x1a   : > { %p83_p3 = scmp.ne.s32.totalorder %s2920_s28, %s2916_s27  ;;  %p3673_p4 = scmp.eq.s32.totalorder %s3061_s0, 0 }
  0x1b   : > { %s3077_s22 = scalar_select %p42_p1, %s2924_s29, %s44_s20  }
  0x1c   : > { %p3079_p5 = por %p52_p2, %p51_p0  ;;  %p3085_p6 = por %p3673_p4, %p83_p3 }
  0x1d   : > { %3693 = sst [smem:[#allocation22_spill]] %s3077_s22  ;;  %p443_p7 = scmp.eq.s32.totalorder %s3061_s0, 1 }
  0x1e   : > { %s3694_s2 = scalar_select %p3079_p5, 1, 0 }
  0x1f   : > { %s3695_s23 = scalar_select %p3085_p6, 1, 0 }
  0x20   : > { %p449_p8 = scmp.eq.s32.totalorder %s2218_s19, 1  ;;  %p2219_p9 = scmp.ge.s32.totalorder %s2928_s30, 1 }
  0x21   : > { %p456_p10 = scmp.lt.s32.totalorder %s2928_s30, 3  ;;  %p3092_p11 = por %p443_p7, %p51_p0 }
  0x22   : > { %p3096_p12 = por %p449_p8, %p83_p3  ;;  %s2930_s20 = smov [#allocation6]  }
  0x23   : > { %s3696_s24 = scalar_select %p3092_p11, 1, 0 }
  0x24   : > { %s3698_s25 = scalar_select %p3096_p12, 1, 0 }
  0x25   : > { %3697 = sst [smem:[#allocation23_spill]] %s3696_s24  ;;  %p3100_p13 = pnand %p2219_p9, %p456_p10 }
  0x26   : > { %3699 = sst [smem:[#allocation24_spill]] %s3698_s25  ;;  %s468_s21 = sshll.u32 %s2930_s20, 4  ;;  %s469_s21 = int_to_ptr.vmem [resolvable:$true] %s468_s21 }
  0x27   : > { %s3700_s26 = scalar_select %p3100_p13, 1, 0 }
  0x28   : > { %p2462_p1 = pneg %p3100_p13  ;;  %s2931_s22 = smov [#allocation9]  }
  0x29   : > { %s501_s1 = sshll.u32 %s2931_s22, 4  ;;  %s3702_s18 = sld [smem:[#allocation27_spill]]  ;;  %s3112_s1 = int_to_ptr.vmem [resolvable:$true] %s501_s1 }
  0x2a   : > { %p3108_p2 = pnand %p2462_p1, %p3673_p4 }
  0x2c   : > { %p3122_p3 = pneg %p3108_p2 }
  0x2f   : > { %s2682_s24 = scalar_lea.hbm %s3702_s18, 256 }
  0x30   : > { %p2683_p0 = scmp.ne.s32.totalorder %s3702_s18, %s2682_s24  ;;  %p2689_p9 = scmp.lt.u32.totalorder %s2682_s24, %s3702_s18 }
  0x32   : > { %p2685_p7 = pnand %p3122_p3, %p2683_p0 }
  0x34   : > { %p2686_p8 = pneg %p2685_p7 }
  0x36   : > { %p2691_p10 = pnand %p2689_p9, %p2686_p8 }
  0x38   : > { %2694 = shalt.err (!%p2691_p10)
}
  0x39   : > { %s2695_s27 = scalar_lea.vmem %s469_s21, 256  ;;  %p2703_p11 = scmp.lt.s32.totalorder %s469_s21, %s469_s21 }
  0x3a   : > { %p2696_p1 = scmp.ne.s32.totalorder %s469_s21, %s2695_s27  ;;  %p2704_p6 = scmp.lt.s32.totalorder %s2695_s27, %s2695_s27 }
  0x3c   : > { %p2698_p4 = pnand %p2696_p1, %p3122_p3  ;;  %p2705_p13 = por %p2704_p6, %p2703_p11 }
  0x3e   : > { %p2699_p12 = pneg %p2698_p4 }
  0x40   : > { %p2706_p5 = pnand %p2705_p13, %p2699_p12 }
  0x42   : > { %2709 = shalt.err (!%p2706_p5)
}
  0x43   : > { %s2932_s15 = smov 128   ;;  %s2933_s17 = smov 8  }
  0x44   : > { %2465 = dma.hbm_to_vmem [thread:$0]  (!%p3108_p2), %s3702_s18, 256, %s469_s21, [#allocation7], %s2932_s15, %s2932_s15, %s2933_s17  }
  0x45   : > { %s3704_s6 = sld [smem:[#allocation28_spill]] }
  0x4b   : > { %s2710_s13 = scalar_lea.hbm %s3704_s6, 16 }
  0x4c   : > { %p2711_p4 = scmp.ne.s32.totalorder %s3704_s6, %s2710_s13  ;;  %p2717_p11 = scmp.lt.u32.totalorder %s2710_s13, %s3704_s6 }
  0x4e   : > { %p2713_p6 = pnand %p2711_p4, %p3122_p3 }
  0x50   : > { %p2714_p5 = pneg %p2713_p6 }
  0x52   : > { %p2719_p12 = pnand %p2717_p11, %p2714_p5 }
  0x54   : > { %2722 = shalt.err (!%p2719_p12)
}
  0x55   : > { %s2723_s21 = scalar_lea.vmem %s3112_s1, 16  ;;  %s2730_s9 = scalar_lea.vmem %s3112_s1, 32 }
  0x56   : > { %p2724_p13 = scmp.ne.s32.totalorder %s3112_s1, %s2723_s21  ;;  %p2731_p8 = scmp.lt.s32.totalorder %s3112_s1, %s3112_s1 }
  0x57   : > { %p2732_p9 = scmp.lt.s32.totalorder %s2730_s9, %s2723_s21 }
  0x58   : > { %p2726_p0 = pnand %p2724_p13, %p3122_p3 }
  0x59   : > { %p2733_p10 = por %p2732_p9, %p2731_p8 }
  0x5a   : > { %p2727_p7 = pneg %p2726_p0 }
  0x5c   : > { %p2734_p1 = pnand %p2733_p10, %p2727_p7 }
  0x5e   : > { %2737 = shalt.err (!%p2734_p1)
}
  0x5f   : > { %2471 = dma.hbm_to_vmem [thread:$0]  (!%p3108_p2), %s3704_s6, 16, %s3112_s1, [#allocation10]  }
  0x60   : > { %s2934_s13 = smov [#allocation8]   ;;  %s2738_s24 = scalar_lea.hbm %s3650_s5, 512 }
  0x61   : > { %s487_s15 = sshll.u32 %s2934_s13, 4  ;;  %p2739_p4 = scmp.ne.s32.totalorder %s3650_s5, %s2738_s24  ;;  %s488_s15 = int_to_ptr.vmem [resolvable:$true] %s487_s15 }
  0x62   : > { %p2745_p11 = scmp.lt.u32.totalorder %s2738_s24, %s3650_s5 }
  0x63   : > { %p2741_p6 = pnand %p2739_p4, %p3122_p3 }
  0x65   : > { %p2742_p5 = pneg %p2741_p6 }
  0x67   : > { %p2747_p12 = pnand %p2745_p11, %p2742_p5 }
  0x69   : > { %2750 = shalt.err (!%p2747_p12)
}
  0x6a   : > { %s2751_s1 = scalar_lea.vmem %s488_s15, 512  ;;  %p2759_p8 = scmp.lt.s32.totalorder %s488_s15, %s488_s15 }
  0x6b   : > { %p2752_p13 = scmp.ne.s32.totalorder %s488_s15, %s2751_s1  ;;  %p2760_p9 = scmp.lt.s32.totalorder %s2751_s1, %s2751_s1 }
  0x6d   : > { %p2754_p0 = pnand %p2752_p13, %p3122_p3  ;;  %p2761_p10 = por %p2760_p9, %p2759_p8 }
  0x6f   : > { %p2755_p7 = pneg %p2754_p0 }
  0x71   : > { %p2762_p1 = pnand %p2761_p10, %p2755_p7 }
  0x73   : > { %2765 = shalt.err (!%p2762_p1)
}
  0x74   : > { %s2935_s9 = smov 64   ;;  %s2936_s8 = smov 4  }
  0x75   : > { %2468 = dma.hbm_to_vmem [thread:$0]  (!%p3108_p2), %s3650_s5, 512, %s488_s15, [#allocation7], %s2935_s9, %s2935_s9, %s2936_s8  }
  0x76   : > { %s2937_s17 = smov [#allocation11]   ;;  %s2938_s24 = smov [#allocation12]  }
  0x77   : > { %s526_s14 = sshll.u32 %s2937_s17, 4  ;;  %s548_s25 = sshll.u32 %s2938_s24, 4  ;;  %s527_s14 = int_to_ptr.vmem [resolvable:$true] %s526_s14  ;;  %s3183_s25 = int_to_ptr.vmem [resolvable:$true] %s548_s25 }
  0x78   : > { %s2766_s21 = scalar_lea.hbm %s3657_s12, 1024 }
  0x79   : > { %p2767_p4 = scmp.ne.s32.totalorder %s3657_s12, %s2766_s21  ;;  %p2773_p11 = scmp.lt.u32.totalorder %s2766_s21, %s3657_s12 }
  0x7b   : > { %p2769_p6 = pnand %p2767_p4, %p3122_p3 }
  0x7d   : > { %p2770_p5 = pneg %p2769_p6 }
  0x7f   : > { %p2775_p12 = pnand %p2773_p11, %p2770_p5 }
  0x81   : > { %2778 = shalt.err (!%p2775_p12)
}
  0x82   : > { %s2779_s13 = scalar_lea.vmem %s527_s14, 1024  ;;  %p2787_p8 = scmp.lt.s32.totalorder %s527_s14, %s527_s14 }
  0x83   : > { %p2780_p13 = scmp.ne.s32.totalorder %s527_s14, %s2779_s13  ;;  %p2788_p9 = scmp.lt.s32.totalorder %s2779_s13, %s2779_s13 }
  0x85   : > { %p2782_p0 = pnand %p2780_p13, %p3122_p3  ;;  %p2789_p10 = por %p2788_p9, %p2787_p8 }
  0x87   : > { %p2783_p7 = pneg %p2782_p0 }
  0x89   : > { %p2790_p1 = pnand %p2789_p10, %p2783_p7 }
  0x8b   : > { %2793 = shalt.err (!%p2790_p1)
}
  0x8c   : > { %2474 = dma.hbm_to_vmem [thread:$0]  (!%p3108_p2), %s3657_s12, 1024, %s527_s14, [#allocation10], %s2935_s9, %s2935_s9, %s2936_s8  }
  0x8d   : > { %s2794_s27 = scalar_lea.hbm %s3661_s16, 1024 }
  0x8e   : > { %p2795_p4 = scmp.ne.s32.totalorder %s3661_s16, %s2794_s27  ;;  %p2801_p11 = scmp.lt.u32.totalorder %s2794_s27, %s3661_s16 }
  0x90   : > { %p2797_p6 = pnand %p2795_p4, %p3122_p3 }
  0x92   : > { %p2798_p5 = pneg %p2797_p6 }
  0x94   : > { %p2803_p12 = pnand %p2801_p11, %p2798_p5 }
  0x96   : > { %2806 = shalt.err (!%p2803_p12)
}
  0x97   : > { %s2807_s14 = scalar_lea.vmem %s3183_s25, 1024  ;;  %p2815_p8 = scmp.lt.s32.totalorder %s3183_s25, %s3183_s25 }
  0x98   : > { %p2808_p13 = scmp.ne.s32.totalorder %s3183_s25, %s2807_s14  ;;  %p2816_p9 = scmp.lt.s32.totalorder %s2807_s14, %s2807_s14 }
  0x9a   : > { %p2810_p0 = pnand %p2808_p13, %p3122_p3  ;;  %p2817_p10 = por %p2816_p9, %p2815_p8 }
  0x9c   : > { %p2811_p7 = pneg %p2810_p0 }
  0x9e   : > { %p2818_p1 = pnand %p2817_p10, %p2811_p7 }
  0xa0   : > { %2821 = shalt.err (!%p2818_p1)
}
  0xa1   : > { %2477 = dma.hbm_to_vmem [thread:$0]  (!%p3108_p2), %s3661_s16, 1024, %s3183_s25, [#allocation13], %s2935_s9, %s2935_s9, %s2936_s8  }
  0xa2   : > { %p3678_p3 = scmp.ge.s32.totalorder %s2928_s30, 2 }
  0xa3   : > { %p3705_p4 = scmp.ne.s32.totalorder (!%p3678_p3), %s3694_s2, 0 }
  0xa4   : > { %561 = sbr.rel (%p3678_p3) target bundleno = 215 (0xd7), region = 80 }
  0xab   : > { %564 = sbr.rel (!%p3705_p4) target bundleno = 186 (0xba), region = 84  ;;  %s566_s20 = sand.u32 (%p3705_p4), 1, %s2924_s29  }
  0xac   : > { %s2227_s19 = sshll.u32 (%p3705_p4), %s2928_s30, 2  ;;  %s2226_s17 = sshll.u32 (%p3705_p4), %s566_s20, 5 }
  0xad   : > { %s3706_s27 = sld [smem:[#allocation25_spill]] (%p3705_p4)  ;;  %s568_s9 = scalar_lea.vmem (%p3705_p4), [#allocation2], %s2226_s17 }
  0xb3   : > { %s570_s21 = scalar_lea.vmem %s3706_s27, %s2227_s19 }
  0xb4   : > { %v586_v0 = vld [vmem:[%s570_s21] sm:$0xf]  ;;  %v588_v1 = vld [vmem:[%s570_s21 + $0x8] sm:$0xf]  ;;  %v590_v2 = vld [vmem:[%s570_s21 + $0x10] sm:$0xf] }
  0xb5   : > { %587 = vst [vmem:[%s568_s9] sm:$0xf] %v586_v0  ;;  %589 = vst [vmem:[%s568_s9 + $0x4] sm:$0xf] %v588_v1  ;;  %v592_v3 = vld [vmem:[%s570_s21 + $0x18] sm:$0xf] }
  0xb6   : > { %v594_v4 = vld [vmem:[%s570_s21 + $0x20] sm:$0xf]  ;;  %591 = vst [vmem:[%s568_s9 + $0x8] sm:$0xf] %v590_v2  ;;  %593 = vst [vmem:[%s568_s9 + $0xc] sm:$0xf] %v592_v3 }
  0xb7   : > { %595 = vst [vmem:[%s568_s9 + $0x10] sm:$0xf] %v594_v4  ;;  %v596_v5 = vld [vmem:[%s570_s21 + $0x28] sm:$0xf]  ;;  %v598_v6 = vld [vmem:[%s570_s21 + $0x30] sm:$0xf] }
  0xb8   : > { %v600_v7 = vld [vmem:[%s570_s21 + $0x38] sm:$0xf]  ;;  %597 = vst [vmem:[%s568_s9 + $0x14] sm:$0xf] %v596_v5  ;;  %599 = vst [vmem:[%s568_s9 + $0x18] sm:$0xf] %v598_v6 }
  0xb9   : > { %601 = vst [vmem:[%s568_s9 + $0x1c] sm:$0xf] %v600_v7 }
  0xba PF: > { %s641_s8 = sand.u32 1, %s2924_s29   ;;  %s2229_s25 = sshll.u32 %s2928_s30, 6 }
  0xbb   : > { %s2228_s1 = sshll.u32 %s641_s8, 2  ;;  %s3707_s14 = sld [smem:[#allocation26_spill]] }
  0xbc   : > { %s645_s6 = scalar_lea.vmem [#allocation3], %s2228_s1  ;;  %s642_s19 = scalar_lea.sflag [#allocation4], %s641_s8 }
  0xbd   : > { %s652_s20 = sshll.u32 %s645_s6, 4  ;;  %p3708_p6 = scmp.ne.s32.totalorder %s3694_s2, 0  ;;  %s653_s20 = int_to_ptr.vmem [resolvable:$true] %s652_s20 }
  0xc1   : > { %s3247_s13 = scalar_lea.hbm %s3707_s14, %s2229_s25  ;;  %s2826_s27 = scalar_lea.hbm %s3707_s14, 128 }
  0xc2   : > { %s2822_s17 = scalar_lea.hbm %s3247_s13, 64  ;;  %p2827_p12 = scmp.lt.u32.totalorder %s3247_s13, %s3707_s14 }
  0xc3   : > { %p2823_p2 = scmp.ne.s32.totalorder %s3247_s13, %s2822_s17  ;;  %p2828_p13 = scmp.lt.u32.totalorder %s2826_s27, %s2822_s17 }
  0xc4   : > { %p2830_p7 = scmp.lt.u32.totalorder %s2822_s17, %s3247_s13 }
  0xc5   : > { %p2824_p5 = pnand %p2823_p2, %p3708_p6  ;;  %p2829_p0 = por %p2828_p13, %p2827_p12 }
  0xc7   : > { %p2825_p11 = pneg %p2824_p5  ;;  %p2831_p8 = por %p2830_p7, %p2829_p0 }
  0xc9   : > { %p2832_p9 = pnand %p2831_p8, %p2825_p11 }
  0xcb   : > { %2835 = shalt.err (!%p2832_p9)
}
  0xcc   : > { %s2836_s8 = scalar_lea.vmem %s653_s20, 64  ;;  %s2939_s25 = smov [#allocation3]  }
  0xcd   : > { %p2837_p10 = scmp.ne.s32.totalorder %s653_s20, %s2836_s8  ;;  %s2840_s1 = sshll.u32 %s2939_s25, 4  ;;  %s2841_s1 = int_to_ptr.vmem [resolvable:$false] %s2840_s1 }
  0xce   : > { %s2842_s10 = scalar_lea.vmem %s2841_s1, 128  ;;  %p2843_p2 = scmp.lt.s32.totalorder %s653_s20, %s2841_s1 }
  0xcf   : > { %p2838_p1 = pnand %p2837_p10, %p3708_p6  ;;  %p2844_p5 = scmp.lt.s32.totalorder %s2842_s10, %s2836_s8 }
  0xd1   : > { %p2839_p4 = pneg %p2838_p1  ;;  %p2845_p3 = por %p2844_p5, %p2843_p2 }
  0xd3   : > { %p2846_p12 = pnand %p2845_p3, %p2839_p4 }
  0xd5   : > { %2849 = shalt.err (!%p2846_p12)
}
  0xd6   : > { %2448 = dma.hbm_to_vmem [thread:$0]  (%p3708_p6), %s3247_s13, 64, %s653_s20, %s642_s19  }
  0xd7 PF: > { %p3709_p11 = scmp.ne.s32.totalorder %s3700_s26, 0 }
  0xd8   : > { %s3269_s15 = sand.u32 (!%p3709_p11), 1, %s2920_s28   ;;  %p3710_p3 = scmp.ne.s32.totalorder (!%p3709_p11), %s3695_s23, 0 }
  0xd9   : > { %661 = sbr.rel (%p3709_p11) target bundleno = 5646 (0x160e), region = 129  ;;  %s2231_s6 = sshll.u32 (!%p3709_p11), %s3269_s15, 5 }
  0xda   : > { %s2232_s17 = sshll.u32 (!%p3709_p11), %s3269_s15, 2  ;;  %s3273_s24 = scalar_lea.vmem (!%p3709_p11), [#allocation2], %s2231_s6 }
  0xdb   : > { %s671_s22 = scalar_lea.sflag (!%p3709_p11), [#allocation4], %s3269_s15  ;;  %s3276_s27 = scalar_lea.vmem (!%p3709_p11), [#allocation3], %s2232_s17 }
  0xe0   : > { %2895 = dma.done.wait (%p3710_p3), %s671_s22, 64  }
  0xe1   : > { %2897 = vsyncadd (%p3710_p3), %s671_s22, 4294967232  ;;  %p3711_p6 = scmp.eq.s32.totalorder %s3061_s0, 0 }
  0xe3   : > { %2899 = dma.done.wait (%p3711_p6), [#allocation7], 768   ;;  %p3712_p13 = pmov %p3711_p6 }
  0xe4   : > { %p3713_p0 = pmov %p3711_p6 }
  0xe5   : > { %2901 = vsyncadd (%p3712_p13), [#allocation7], 4294966528 }
  0xe6   : > { %2903 = dma.done.wait (%p3713_p0), [#allocation10], 1040   ;;  %p3714_p7 = pmov %p3713_p0 }
  0xe7   : > { %p3715_p8 = pmov %p3713_p0 }
  0xe8   : > { %2905 = vsyncadd (%p3714_p7), [#allocation10], 4294966256 }
  0xe9   : > { %2907 = dma.done.wait (%p3715_p8), [#allocation13], 1024   ;;  %p3716_p9 = pmov %p3713_p0 }
  0xea   : > { %v2940_v8 = vmov 0   ;;  %vm823_vm0 = vcmask 1045504   ;;  %v2538_v9 = vld [vmem:[#allocation6 + $0x4] ss:$8 sps:$4 sm:$0x3f]   ;;  %vm810_vm1 = vcmask 97280   ;;  %v772_v23 = vlaneseq }
  0xeb   : > { %2909 = vsyncadd (%p3716_p9), [#allocation13], 4294966272  ;;  %882 = vmatprep.mubr.bf16.mxu1 %v2940_v8  ;;  %862 = vmatprep.mubr.bf16.mxu0 %v2940_v8  ;;  %v2540_v10 = vld [vmem:[#allocation6] ss:$8 sps:$4 sm:$0x3f]   ;;  %v2552_v17 = vld [vmem:[%s3273_s24] sm:$0xff]  }
  0xec   : > { %2436 = vmatprep.subr.msk.bf16.mxu1 %vm823_vm0, %v2538_v9  ;;  %2245 = vmatprep.subr.msk.bf16.mxu0 %vm823_vm0, %v2538_v9  ;;  %v825_v11 = vsel %vm823_vm0, %v2540_v10, 0  ;;  %v2541_v12 = vld [vmem:[%s3273_s24 + $0x10] sm:$0xff]   ;;  %v3300_v13 = vld [vmem:[%s3648_s3 + $0x4] ss:$8 sps:$4 sm:$0xff]   ;;  %v3305_v14 = vld [vmem:[%s3648_s3] ss:$8 sps:$4 sm:$0xff]  }
  0xed   : > { %2437 = vmatpush1.bf16.msra.mxu1 %v825_v11  ;;  %831 = vmatpush1.bf16.msra.mxu0 %v825_v11  ;;  %v3311_v15 = vld [vmem:[%s3648_s3 + $0x14] ss:$8 sps:$4 sm:$0xff]   ;;  %v3318_v16 = vld [vmem:[%s3648_s3 + $0x10] ss:$8 sps:$4 sm:$0xff]   ;;  %v3328_v19 = vld [vmem:[%s3648_s3 + $0x24] ss:$8 sps:$4 sm:$0xff]  }
  0xee   : > { %947 = vmatprep.subr.bf16.mxu1 %v3300_v13  ;;  %1101 = vmatprep.subr.bf16.mxu0 %v3300_v13  ;;  %v2548_v18 = vld [vmem:[%s3273_s24 + $0x18] sm:$0xff]   ;;  %v3333_v20 = vld [vmem:[%s3648_s3 + $0x20] ss:$8 sps:$4 sm:$0xff]   ;;  %v773_v27 = vshrl.u32 %v772_v23, 7  ;;  %s2941_s13 = smov 64   ;;  %vm943_vm2 = vcmask 523264  }
  0xef   : > { %v3339_v21 = vld [vmem:[%s3648_s3 + $0x34] ss:$8 sps:$4 sm:$0xff]   ;;  %v3349_v22 = vld [vmem:[%s3648_s3 + $0x30] ss:$8 sps:$4 sm:$0xff]   ;;  %v770_v34 = vld [vmem:[%s3649_s4] sm:$0x3] }
  0xf0   : > { %2248 = vmatmul.mubr.msk.bf16.vlgmr.msra.gmra.mrb[0].mxu1 %vm810_vm1, %v2541_v12  ;;  %2246 = vmatmul.mubr.msk.bf16.vlgmr.msra.gmra.mrb[0].mxu0 %vm810_vm1, %v2552_v17  ;;  %v774_v33 = vsub.s32 0, %v773_v27  ;;  %v778_v35 = vsub.s32 1, %v773_v27  ;;  %vm1659_vm3 = vcmask 130048   ;;  %vm2943_vm4 = vmmov 0   ;;  %s3719_s9 = sld [smem:[#allocation31_spill]]  ;;  %s3720_s22 = sld [smem:[#allocation32_spill]] }
  0xf1   : > { %948 = vmatpush1.bf16.msra.mxu1 %v3305_v14  ;;  %892 = vmatprep.mubr.bf16.mxu1 %v2940_v8  ;;  %s3721_s26 = sld [smem:[#allocation33_spill]]  ;;  %s3722_s20 = sld [smem:[#allocation34_spill]] }
  0xf2   : > { %949 = vmatprep.subr.bf16.mxu1 %v3311_v15  ;;  %1102 = vmatpush1.bf16.msra.mxu0 %v3305_v14  ;;  %v3390_v39 = vrot.slane %v770_v34, %v774_v33  ;;  %v3394_v41 = vrot.slane %v770_v34, %v778_v35  ;;  %s3724_s8 = sld [smem:[#allocation23_spill]]  ;;  %s2321_s25 = sshll.u32 %s3061_s0, 7 }
  0xf3   : > { %872 = vmatprep.mubr.bf16.mxu0 %v2940_v8  ;;  %1103 = vmatprep.subr.bf16.mxu0 %v3311_v15  ;;  %s2069_s23 = scalar_lea.sflag [#allocation5], %s3269_s15 }
  0xf5   : > { %950 = vmatpush1.bf16.msra.mxu1 %v3318_v16 }
  0xf6   : > { %951 = vmatprep.subr.bf16.mxu1 %v3328_v19  ;;  %1104 = vmatpush1.bf16.msra.mxu0 %v3318_v16 }
  0xf7   : > { %1105 = vmatprep.subr.bf16.mxu0 %v3328_v19 }
  0xf8   : > { %2249 = vmatmul.mubr.msk.bf16.gmra.mrb[4].mxu1 %vm810_vm1, %v2548_v18  ;;  %p3726_p1 = scmp.ne.s32.totalorder %s3724_s8, 0 }
  0xf9   : > { %952 = vmatpush1.bf16.msra.mxu1 %v3333_v20  ;;  %979 = vmatprep.mubr.bf16.mxu1 %v2940_v8 }
  0xfa   : > { %953 = vmatprep.subr.bf16.mxu1 %v3339_v21  ;;  %1106 = vmatpush1.bf16.msra.mxu0 %v3333_v20 }
  0xfb   : > { %1107 = vmatprep.subr.bf16.mxu0 %v3339_v21 }
  0xfd   : > { %954 = vmatpush1.bf16.msra.mxu1 %v3349_v22 }
  0xfe   : > { %1024 = vmatprep.subr.bf16.mxu1 %v3300_v13  ;;  %1108 = vmatpush1.bf16.msra.mxu0 %v3349_v22 }
  0xff   : > { %1255 = vmatprep.subr.bf16.mxu0 %v3300_v13 }
 0x100   : > { %980 = vmatmul.mubr.bf16.vlgmr.msra.gmra.mrb[8].mxu1 %v2940_v8 }
 0x101   : > { %1025 = vmatpush1.bf16.msra.mxu1 %v3305_v14  ;;  %1056 = vmatprep.mubr.bf16.mxu1 %v2940_v8 }
 0x102   : > { %1026 = vmatprep.subr.bf16.mxu1 %v3311_v15 }
 0x105   : > { %1027 = vmatpush1.bf16.msra.mxu1 %v3318_v16 }
 0x106   : > { %1028 = vmatprep.subr.bf16.mxu1 %v3328_v19 }
 0x109   : > { %1029 = vmatpush1.bf16.msra.mxu1 %v3333_v20 }
 0x10a   : > { %1030 = vmatprep.subr.bf16.mxu1 %v3339_v21 }
 0x10d   : > { %1031 = vmatpush1.bf16.msra.mxu1 %v3349_v22 }
 0x10e   : > { %1178 = vmatprep.subr.bf16.mxu1 %v3300_v13 }
 0x1c3   : > { %v3373_v24 = vpop.f32.mrb[0].mxu1  ;;  %v864_v29 = vpop.f32.mrb[0].mxu0 }
 0x1c4   : > { %v3375_v25 = vpop.f32.mrb[1].mxu1  ;;  %v866_v30 = vpop.f32.mrb[1].mxu0  ;;  %v865_v42 = vadd.f32 %v864_v29, %v3390_v39 }
 0x1c5   : > { %v3377_v26 = vpop.f32.mrb[2].mxu1  ;;  %v868_v31 = vpop.f32.mrb[2].mxu0  ;;  %v867_v43 = vadd.f32 %v866_v30, %v3394_v41 }
 0x1c6   : > { %v3379_v28 = vpop.f32.mrb[3].mxu1  ;;  %v870_v32 = vpop.f32.mrb[3].mxu0  ;;  %v869_v4 = vadd.f32 %v868_v31, %v3390_v39 }
 0x1c7   : > { %v871_v5 = vadd.f32 %v870_v32, %v3394_v41  ;;  %v2556_v32 = vld [vmem:[%s3273_s24 + $0x8] sm:$0xff]  }
 0x1c8   : > { %2247 = vmatmul.mubr.msk.bf16.gmra.mrb[4].mxu0 %vm810_vm1, %v2556_v32 }
 0x1c9   : > { %1133 = vmatprep.mubr.bf16.mxu0 %v2940_v8 }
 0x1cb   : > { %v3384_v36 = vpop.f32.mrb[4].mxu1 }
 0x1cc   : > { %v3386_v37 = vpop.f32.mrb[5].mxu1 }
 0x1cd   : > { %v3388_v38 = vpop.f32.mrb[6].mxu1 }
 0x1ce   : > { %v3392_v40 = vpop.f32.mrb[7].mxu1 }
 0x1d3   : > { %v981_v44 = vpop.f32.mrb[8].mxu1 }
 0x1d4   : > { %v988_v45 = vadd.f32 %v981_v44, %v865_v42  ;;  %v983_v46 = vpop.f32.mrb[9].mxu1 }
 0x1d5   : > { %v989_v47 = vadd.f32 %v983_v46, %v867_v43  ;;  %v985_v48 = vpop.f32.mrb[10].mxu1 }
 0x1d6   : > { %v986_v49 = vpop.f32.mrb[11].mxu1  ;;  %v2258_v51 = vmul.f32 -1.442695, %v988_v45 }
 0x1d7   : > { %2586 = vtanh.f32 %v989_v47  ;;  %v2259_v61 = vmul.f32 -1.442695, %v989_v47 }
 0x1d8   : > { %2588 = vpow2.f32 %v2258_v51 }
 0x1e1   : > { %v2587_v50 = vpop.eup %2586 }
 0x1e2   : > { %1005 = vrot.lane.b32.xlu0 %v2587_v50, %s2941_s13  ;;  %v2589_v52 = vpop.eup %2588 }
 0x1e3   : > { %v996_v53 = vadd.f32 1.0, %v2589_v52 }
 0x1e5   : > { %2590 = vrcp.f32 %v996_v53 }
 0x1ef   : > { %v2591_v54 = vpop.eup %2590 }
 0x1f0   : > { %v1003_v57 = vmul.f32 0.0, %v2591_v54 }
 0x254   : > { %v1006_v55 = vpop.permute.xlu0 %1005 }
 0x255   : > { %v1008_v56 = vmul.f32 %v2591_v54, %v1006_v55 }
 0x257   : > { %1010 = vrot.lane.b32.xlu0 %v1008_v56, %s2941_s13 }
 0x29b   : > { %v874_v44 = vpop.f32.mrb[4].mxu0 }
 0x29c   : > { %v876_v45 = vpop.f32.mrb[5].mxu0  ;;  %v875_v54 = vadd.f32 %v874_v44, %v3390_v39 }
 0x29d   : > { %v3419_v46 = vpop.f32.mrb[6].mxu0  ;;  %v877_v55 = vadd.f32 %v876_v45, %v3394_v41 }
 0x29e   : > { %v3421_v47 = vpop.f32.mrb[7].mxu0 }
 0x2c9   : > { %v1011_v58 = vpop.permute.xlu0 %1010 }
 0x2ca   : > { %v1013_v59 = vadd.f32 %v1011_v58, %v1003_v57 }
 0x2cc   : > { %2592 = vtanh.f32 %v1013_v59 }
 0x2cd   : > { %2594 = vpow2.f32 %v2259_v61 }
 0x2d6   : > { %v2593_v60 = vpop.eup %2592 }
 0x2d7   : > { %1016 = vrot.lane.b32.xlu1 %v2593_v60, %s2941_s13  ;;  %v2595_v62 = vpop.eup %2594 }
 0x2d8   : > { %v997_v63 = vadd.f32 1.0, %v2595_v62 }
 0x2da   : > { %2596 = vrcp.f32 %v997_v63 }
 0x2e4   : > { %v2597_v0 = vpop.eup %2596 }
 0x349   : > { %v1017_v1 = vpop.permute.xlu1 %1016 }
 0x34a   : > { %v1019_v2 = vmul.f32 %v2597_v0, %v1017_v1 }
 0x34c   : > { %v1020_v3 = vpack.c.bf16 %v1019_v2, %v1019_v2 }
 0x34e   : > { %2260 = vmatmul.mubr.msk.bf16.vlgmr.msra.gmra.mrb[12].mxu1 %vm943_vm2, %v1020_v3 }
 0x34f   : > { %1179 = vmatpush1.bf16.msra.mxu1 %v3305_v14  ;;  %1210 = vmatprep.mubr.bf16.mxu1 %v2940_v8 }
 0x350   : > { %1180 = vmatprep.subr.bf16.mxu1 %v3311_v15 }
 0x353   : > { %1181 = vmatpush1.bf16.msra.mxu1 %v3318_v16 }
 0x354   : > { %1182 = vmatprep.subr.bf16.mxu1 %v3328_v19 }
 0x357   : > { %1183 = vmatpush1.bf16.msra.mxu1 %v3333_v20 }
 0x358   : > { %1184 = vmatprep.subr.bf16.mxu1 %v3339_v21 }
 0x35b   : > { %1185 = vmatpush1.bf16.msra.mxu1 %v3349_v22 }
 0x35c   : > { %1332 = vmatprep.subr.bf16.mxu1 %v3300_v13 }
 0x421   : > { %v1058_v6 = vpop.f32.mrb[12].mxu1 }
 0x422   : > { %v1065_v7 = vadd.f32 %v1058_v6, %v869_v4  ;;  %v1060_v9 = vpop.f32.mrb[13].mxu1 }
 0x423   : > { %v1066_v10 = vadd.f32 %v1060_v9, %v871_v5  ;;  %v1062_v11 = vpop.f32.mrb[14].mxu1 }
 0x424   : > { %v1063_v12 = vpop.f32.mrb[15].mxu1  ;;  %v2261_v18 = vmul.f32 -1.442695, %v1065_v7 }
 0x425   : > { %2598 = vtanh.f32 %v1066_v10  ;;  %v2262_v43 = vmul.f32 -1.442695, %v1066_v10 }
 0x426   : > { %2600 = vpow2.f32 %v2261_v18 }
 0x42f   : > { %v2599_v17 = vpop.eup %2598 }
 0x430   : > { %1082 = vrot.lane.b32.xlu1 %v2599_v17, %s2941_s13  ;;  %v2601_v23 = vpop.eup %2600 }
 0x431   : > { %v1073_v27 = vadd.f32 1.0, %v2601_v23 }
 0x433   : > { %2602 = vrcp.f32 %v1073_v27 }
 0x43d   : > { %v2603_v29 = vpop.eup %2602 }
 0x43e   : > { %v1080_v33 = vmul.f32 %v2603_v29, %v1013_v59 }
 0x4a2   : > { %v1083_v30 = vpop.permute.xlu1 %1082 }
 0x4a3   : > { %v1085_v31 = vmul.f32 %v2603_v29, %v1083_v30  ;;  %v879_v29 = vadd.f32 %v3419_v46, %v3390_v39  ;;  %v881_v30 = vadd.f32 %v3421_v47, %v3394_v41 }
 0x4a5   : > { %1087 = vrot.lane.b32.xlu0 %v1085_v31, %s2941_s13 }
 0x517   : > { %v1088_v34 = vpop.permute.xlu0 %1087 }
 0x518   : > { %v1090_v35 = vadd.f32 %v1088_v34, %v1080_v33 }
 0x51a   : > { %2604 = vtanh.f32 %v1090_v35 }
 0x51b   : > { %2606 = vpow2.f32 %v2262_v43 }
 0x524   : > { %v2605_v42 = vpop.eup %2604 }
 0x525   : > { %1093 = vrot.lane.b32.xlu1 %v2605_v42, %s2941_s13  ;;  %v2607_v48 = vpop.eup %2606 }
 0x526   : > { %v1074_v49 = vadd.f32 1.0, %v2607_v48 }
 0x528   : > { %2608 = vrcp.f32 %v1074_v49 }
 0x532   : > { %v2609_v50 = vpop.eup %2608 }
 0x597   : > { %v1094_v51 = vpop.permute.xlu1 %1093 }
 0x598   : > { %v1096_v52 = vmul.f32 %v2609_v50, %v1094_v51 }
 0x59a   : > { %v1097_v53 = vpack.c.bf16 %v1096_v52, %v1096_v52 }
 0x59c   : > { %2263 = vmatmul.mubr.msk.bf16.vlgmr.msra.gmra.mrb[8].mxu0 %vm943_vm2, %v1097_v53 }
 0x59d   : > { %1256 = vmatpush1.bf16.msra.mxu0 %v3305_v14  ;;  %1287 = vmatprep.mubr.bf16.mxu0 %v2940_v8 }
 0x59e   : > { %1257 = vmatprep.subr.bf16.mxu0 %v3311_v15 }
 0x5a1   : > { %1258 = vmatpush1.bf16.msra.mxu0 %v3318_v16 }
 0x5a2   : > { %1259 = vmatprep.subr.bf16.mxu0 %v3328_v19 }
 0x5a5   : > { %1260 = vmatpush1.bf16.msra.mxu0 %v3333_v20 }
 0x5a6   : > { %1261 = vmatprep.subr.bf16.mxu0 %v3339_v21 }
 0x5a9   : > { %1262 = vmatpush1.bf16.msra.mxu0 %v3349_v22 }
 0x5aa   : > { %1409 = vmatprep.subr.bf16.mxu0 %v3300_v13 }
 0x66f   : > { %v1135_v56 = vpop.f32.mrb[8].mxu0 }
 0x670   : > { %v1142_v57 = vadd.f32 %v1135_v56, %v875_v54  ;;  %v1137_v58 = vpop.f32.mrb[9].mxu0 }
 0x671   : > { %v1143_v59 = vadd.f32 %v1137_v58, %v877_v55  ;;  %v1139_v60 = vpop.f32.mrb[10].mxu0 }
 0x672   : > { %v1140_v61 = vpop.f32.mrb[11].mxu0  ;;  %v2264_v63 = vmul.f32 -1.442695, %v1142_v57  ;;  %v885_v60 = vadd.f32 %v3373_v24, %v3390_v39 }
 0x673   : > { %2610 = vtanh.f32 %v1143_v59  ;;  %v2265_v10 = vmul.f32 -1.442695, %v1143_v59  ;;  %v887_v61 = vadd.f32 %v3375_v25, %v3394_v41 }
 0x674   : > { %2612 = vpow2.f32 %v2264_v63 }
 0x67d   : > { %v2611_v62 = vpop.eup %2610 }
 0x67e   : > { %1159 = vrot.lane.b32.xlu0 %v2611_v62, %s2941_s13  ;;  %v2613_v0 = vpop.eup %2612 }
 0x67f   : > { %v1150_v1 = vadd.f32 1.0, %v2613_v0 }
 0x681   : > { %2614 = vrcp.f32 %v1150_v1 }
 0x68b   : > { %v2615_v2 = vpop.eup %2614 }
 0x68c   : > { %v1157_v5 = vmul.f32 %v2615_v2, %v1090_v35 }
 0x6f0   : > { %v1160_v3 = vpop.permute.xlu0 %1159 }
 0x6f1   : > { %v1162_v4 = vmul.f32 %v2615_v2, %v1160_v3 }
 0x6f3   : > { %1164 = vrot.lane.b32.xlu1 %v1162_v4, %s2941_s13 }
 0x765   : > { %v1165_v6 = vpop.permute.xlu1 %1164 }
 0x766   : > { %v1167_v7 = vadd.f32 %v1165_v6, %v1157_v5 }
 0x768   : > { %2616 = vtanh.f32 %v1167_v7 }
 0x769   : > { %2618 = vpow2.f32 %v2265_v10 }
 0x772   : > { %v2617_v9 = vpop.eup %2616 }
 0x773   : > { %1170 = vrot.lane.b32.xlu0 %v2617_v9, %s2941_s13  ;;  %v2619_v11 = vpop.eup %2618 }
 0x774   : > { %v1151_v12 = vadd.f32 1.0, %v2619_v11 }
 0x776   : > { %2620 = vrcp.f32 %v1151_v12 }
 0x780   : > { %v2621_v17 = vpop.eup %2620 }
 0x7e5   : > { %v1171_v18 = vpop.permute.xlu0 %1170 }
 0x7e6   : > { %v1173_v23 = vmul.f32 %v2621_v17, %v1171_v18 }
 0x7e8   : > { %v1174_v27 = vpack.c.bf16 %v1173_v23, %v1173_v23 }
 0x7ea   : > { %2266 = vmatmul.mubr.msk.bf16.vlgmr.msra.gmra.mrb[16].mxu1 %vm943_vm2, %v1174_v27 }
 0x7eb   : > { %1333 = vmatpush1.bf16.msra.mxu1 %v3305_v14  ;;  %1364 = vmatprep.mubr.bf16.mxu1 %v2940_v8 }
 0x7ec   : > { %1334 = vmatprep.subr.bf16.mxu1 %v3311_v15 }
 0x7ef   : > { %1335 = vmatpush1.bf16.msra.mxu1 %v3318_v16 }
 0x7f0   : > { %1336 = vmatprep.subr.bf16.mxu1 %v3328_v19 }
 0x7f3   : > { %1337 = vmatpush1.bf16.msra.mxu1 %v3333_v20 }
 0x7f4   : > { %1338 = vmatprep.subr.bf16.mxu1 %v3339_v21 }
 0x7f7   : > { %1339 = vmatpush1.bf16.msra.mxu1 %v3349_v22 }
 0x7f8   : > { %1486 = vmatprep.subr.bf16.mxu1 %v3300_v13 }
 0x8bd   : > { %v1212_v31 = vpop.f32.mrb[16].mxu1 }
 0x8be   : > { %v1219_v32 = vadd.f32 %v1212_v31, %v879_v29  ;;  %v1214_v33 = vpop.f32.mrb[17].mxu1 }
 0x8bf   : > { %v1220_v34 = vadd.f32 %v1214_v33, %v881_v30  ;;  %v1216_v35 = vpop.f32.mrb[18].mxu1  ;;  %v889_v33 = vadd.f32 %v3377_v26, %v3390_v39 }
 0x8c0   : > { %v1217_v42 = vpop.f32.mrb[19].mxu1  ;;  %v2267_v44 = vmul.f32 -1.442695, %v1219_v32 }
 0x8c1   : > { %2622 = vtanh.f32 %v1220_v34  ;;  %v2268_v53 = vmul.f32 -1.442695, %v1220_v34 }
 0x8c2   : > { %2624 = vpow2.f32 %v2267_v44 }
 0x8cb   : > { %v2623_v43 = vpop.eup %2622 }
 0x8cc   : > { %1236 = vrot.lane.b32.xlu1 %v2623_v43, %s2941_s13  ;;  %v2625_v45 = vpop.eup %2624 }
 0x8cd   : > { %v1227_v13 = vadd.f32 1.0, %v2625_v45 }
 0x8cf   : > { %2626 = vrcp.f32 %v1227_v13 }
 0x8d9   : > { %v2627_v48 = vpop.eup %2626 }
 0x8da   : > { %v1234_v47 = vmul.f32 %v2627_v48, %v1167_v7 }
 0x93e   : > { %v1237_v46 = vpop.permute.xlu1 %1236 }
 0x93f   : > { %v1239_v49 = vmul.f32 %v2627_v48, %v1237_v46 }
 0x941   : > { %1241 = vrot.lane.b32.xlu0 %v1239_v49, %s2941_s13 }
 0x9b3   : > { %v1242_v50 = vpop.permute.xlu0 %1241 }
 0x9b4   : > { %v1244_v51 = vadd.f32 %v1242_v50, %v1234_v47 }
 0x9b6   : > { %2628 = vtanh.f32 %v1244_v51 }
 0x9b7   : > { %2630 = vpow2.f32 %v2268_v53 }
 0x9c0   : > { %v2629_v52 = vpop.eup %2628 }
 0x9c1   : > { %1247 = vrot.lane.b32.xlu1 %v2629_v52, %s2941_s13  ;;  %v2631_v54 = vpop.eup %2630 }
 0x9c2   : > { %v1228_v55 = vadd.f32 1.0, %v2631_v54  ;;  %v895_v54 = vadd.f32 %v3384_v36, %v3390_v39 }
 0x9c4   : > { %2632 = vrcp.f32 %v1228_v55  ;;  %v897_v55 = vadd.f32 %v3386_v37, %v3394_v41 }
 0x9ce   : > { %v2633_v56 = vpop.eup %2632 }
 0xa33   : > { %v1248_v57 = vpop.permute.xlu1 %1247 }
 0xa34   : > { %v1250_v58 = vmul.f32 %v2633_v56, %v1248_v57 }
 0xa36   : > { %v1251_v59 = vpack.c.bf16 %v1250_v58, %v1250_v58 }
 0xa38   : > { %2269 = vmatmul.mubr.msk.bf16.vlgmr.msra.gmra.mrb[12].mxu0 %vm943_vm2, %v1251_v59 }
 0xa39   : > { %1410 = vmatpush1.bf16.msra.mxu0 %v3305_v14  ;;  %1441 = vmatprep.mubr.bf16.mxu0 %v2940_v8 }
 0xa3a   : > { %1411 = vmatprep.subr.bf16.mxu0 %v3311_v15 }
 0xa3d   : > { %1412 = vmatpush1.bf16.msra.mxu0 %v3318_v16 }
 0xa3e   : > { %1413 = vmatprep.subr.bf16.mxu0 %v3328_v19 }
 0xa41   : > { %1414 = vmatpush1.bf16.msra.mxu0 %v3333_v20 }
 0xa42   : > { %1415 = vmatprep.subr.bf16.mxu0 %v3339_v21 }
 0xa45   : > { %1416 = vmatpush1.bf16.msra.mxu0 %v3349_v22 }
 0xb0b   : > { %v1289_v62 = vpop.f32.mrb[12].mxu0 }
 0xb0c   : > { %v1296_v63 = vadd.f32 %v1289_v62, %v885_v60  ;;  %v1291_v0 = vpop.f32.mrb[13].mxu0 }
 0xb0d   : > { %v1297_v1 = vadd.f32 %v1291_v0, %v887_v61  ;;  %v1293_v2 = vpop.f32.mrb[14].mxu0 }
 0xb0e   : > { %v1294_v3 = vpop.f32.mrb[15].mxu0  ;;  %v2270_v5 = vmul.f32 -1.442695, %v1296_v63 }
 0xb0f   : > { %2634 = vtanh.f32 %v1297_v1  ;;  %v2271_v18 = vmul.f32 -1.442695, %v1297_v1 }
 0xb10   : > { %2636 = vpow2.f32 %v2270_v5 }
 0xb19   : > { %v2635_v4 = vpop.eup %2634 }
 0xb1a   : > { %1313 = vrot.lane.b32.xlu0 %v2635_v4, %s2941_s13  ;;  %v2637_v6 = vpop.eup %2636 }
 0xb1b   : > { %v1304_v7 = vadd.f32 1.0, %v2637_v6 }
 0xb1d   : > { %2638 = vrcp.f32 %v1304_v7 }
 0xb27   : > { %v2639_v9 = vpop.eup %2638 }
 0xb28   : > { %v1311_v25 = vmul.f32 %v2639_v9, %v1244_v51 }
 0xb8c   : > { %v1314_v24 = vpop.permute.xlu0 %1313 }
 0xb8d   : > { %v1316_v10 = vmul.f32 %v2639_v9, %v1314_v24 }
 0xb8f   : > { %1318 = vrot.lane.b32.xlu1 %v1316_v10, %s2941_s13 }
 0xc01   : > { %v1319_v11 = vpop.permute.xlu1 %1318 }
 0xc02   : > { %v1321_v12 = vadd.f32 %v1319_v11, %v1311_v25 }
 0xc04   : > { %2640 = vtanh.f32 %v1321_v12 }
 0xc05   : > { %2642 = vpow2.f32 %v2271_v18  ;;  %v901_v18 = vadd.f32 %v3392_v40, %v3394_v41 }
 0xc0e   : > { %v2641_v17 = vpop.eup %2640 }
 0xc0f   : > { %1324 = vrot.lane.b32.xlu0 %v2641_v17, %s2941_s13  ;;  %v2643_v23 = vpop.eup %2642  ;;  %v899_v17 = vadd.f32 %v3388_v38, %v3390_v39 }
 0xc10   : > { %v1305_v27 = vadd.f32 1.0, %v2643_v23 }
 0xc12   : > { %2644 = vrcp.f32 %v1305_v27 }
 0xc1c   : > { %v2645_v29 = vpop.eup %2644 }
 0xc81   : > { %v1325_v30 = vpop.permute.xlu0 %1324 }
 0xc82   : > { %v1327_v31 = vmul.f32 %v2645_v29, %v1325_v30 }
 0xc84   : > { %v1328_v32 = vpack.c.bf16 %v1327_v31, %v1327_v31 }
 0xc86   : > { %2272 = vmatmul.mubr.msk.bf16.vlgmr.msra.gmra.mrb[20].mxu1 %vm943_vm2, %v1328_v32 }
 0xc87   : > { %1487 = vmatpush1.bf16.msra.mxu1 %v3305_v14  ;;  %1518 = vmatprep.mubr.bf16.mxu1 %v2940_v8  ;;  %v891_v14 = vadd.f32 %v3379_v28, %v3394_v41 }
 0xc88   : > { %1488 = vmatprep.subr.bf16.mxu1 %v3311_v15 }
 0xc8b   : > { %1489 = vmatpush1.bf16.msra.mxu1 %v3318_v16 }
 0xc8c   : > { %1490 = vmatprep.subr.bf16.mxu1 %v3328_v19 }
 0xc8f   : > { %1491 = vmatpush1.bf16.msra.mxu1 %v3333_v20 }
 0xc90   : > { %1492 = vmatprep.subr.bf16.mxu1 %v3339_v21 }
 0xc93   : > { %1493 = vmatpush1.bf16.msra.mxu1 %v3349_v22 }
 0xd59   : > { %v1366_v34 = vpop.f32.mrb[20].mxu1 }
 0xd5a   : > { %v1373_v8 = vadd.f32 %v1366_v34, %v889_v33  ;;  %v1368_v35 = vpop.f32.mrb[21].mxu1 }
 0xd5b   : > { %v1374_v15 = vadd.f32 %v1368_v35, %v891_v14  ;;  %v1370_v42 = vpop.f32.mrb[22].mxu1  ;;  %v2559_v35 = vld [vmem:[%s3652_s7] sm:$0xff]  }
 0xd5c   : > { %v1371_v16 = vpop.f32.mrb[23].mxu1  ;;  %v2273_v20 = vmul.f32 -1.442695, %v1373_v8  ;;  %v2557_v8 = vld [vmem:[#allocation8] sm:$0xff]   ;;  %v2558_v42 = vld [vmem:[#allocation8 + $0x8] sm:$0xff]  }
 0xd5d   : > { %2646 = vtanh.f32 %v1374_v15  ;;  %v2274_v46 = vmul.f32 -1.442695, %v1374_v15  ;;  %v2942_v15 = vmov 0.0   ;;  %v1643_v16 = vld [vmem:[%s3276_s27] sm:$0xf]  ;;  %s3718_s27 = sld [smem:[#allocation30_spill]] }
 0xd5e   : > { %2648 = vpow2.f32 %v2273_v20  ;;  %2358 = vmatprep.subr.bf16.mxu0 %v2942_v15  ;;  %2370 = vmatprep.subr.bf16.mxu1 %v2942_v15 }
 0xd67   : > { %v2647_v19 = vpop.eup %2646 }
 0xd68   : > { %1390 = vrot.lane.b32.xlu1 %v2647_v19, %s2941_s13  ;;  %v2649_v21 = vpop.eup %2648  ;;  %v2560_v19 = vld [vmem:[#allocation8 + $0x10] sm:$0xff]  }
 0xd69   : > { %v1381_v22 = vadd.f32 1.0, %v2649_v21 }
 0xd6b   : > { %2650 = vrcp.f32 %v1381_v22  ;;  %v2561_v22 = vld [vmem:[#allocation8 + $0x18] sm:$0xff]  }
 0xd75   : > { %v2651_v43 = vpop.eup %2650 }
 0xd76   : > { %v1388_v28 = vmul.f32 %v2651_v43, %v1321_v12 }
 0xdda   : > { %v1391_v26 = vpop.permute.xlu1 %1390 }
 0xddb   : > { %v1393_v44 = vmul.f32 %v2651_v43, %v1391_v26  ;;  %v2563_v26 = vld [vmem:[%s3656_s11] sm:$0xff]  }
 0xddd   : > { %1395 = vrot.lane.b32.xlu0 %v1393_v44, %s2941_s13  ;;  %v2565_v44 = vld [vmem:[%s3656_s11 + $0x8] sm:$0xff]  }
 0xe4f   : > { %v1396_v45 = vpop.permute.xlu0 %1395 }
 0xe50   : > { %v1398_v13 = vadd.f32 %v1396_v45, %v1388_v28  ;;  %v2567_v45 = vld [vmem:[%s3656_s11 + $0x10] sm:$0xff]  }
 0xe52   : > { %2652 = vtanh.f32 %v1398_v13 }
 0xe53   : > { %2654 = vpow2.f32 %v2274_v46  ;;  %v2573_v46 = vld [vmem:[%s3656_s11 + $0x28] sm:$0xff]  }
 0xe5c   : > { %v2653_v48 = vpop.eup %2652 }
 0xe5d   : > { %1401 = vrot.lane.b32.xlu1 %v2653_v48, %s2941_s13  ;;  %v2655_v49 = vpop.eup %2654  ;;  %v2571_v48 = vld [vmem:[%s3656_s11 + $0x20] sm:$0xff]  }
 0xe5e   : > { %v1382_v47 = vadd.f32 1.0, %v2655_v49 }
 0xe60   : > { %2656 = vrcp.f32 %v1382_v47 }
 0xe6a   : > { %v2657_v50 = vpop.eup %2656 }
 0xecf   : > { %v1402_v51 = vpop.permute.xlu1 %1401 }
 0xed0   : > { %v1404_v52 = vmul.f32 %v2657_v50, %v1402_v51 }
 0xed2   : > { %v1405_v53 = vpack.c.bf16 %v1404_v52, %v1404_v52 }
 0xed4   : > { %2275 = vmatmul.mubr.msk.bf16.vlgmr.msra.gmra.mrb[16].mxu0 %vm943_vm2, %v1405_v53 }
 0xed5   : > { %2359 = vmatpush3.bf16.msra.mxu0 %v2557_v8  ;;  %2366 = vmatprep.mubr.msk.bf16.mxu0 %vm2943_vm4, %v2942_v15  ;;  %v2584_v8 = vld [vmem:[#allocation12 + $0x30] sm:$0xff]  }
 0xed6   : > { %2360 = vmatprep.subr.bf16.mxu0 %v2942_v15 }
 0xed9   : > { %2361 = vmatpush3.bf16.msra.mxu0 %v2558_v42 }
 0xeda   : > { %2362 = vmatprep.subr.bf16.mxu0 %v2942_v15 }
 0xedd   : > { %2363 = vmatpush3.bf16.msra.mxu0 %v2560_v19 }
 0xede   : > { %2364 = vmatprep.subr.bf16.mxu0 %v2942_v15 }
 0xee1   : > { %2365 = vmatpush3.bf16.msra.mxu0 %v2561_v22 }
 0xee2   : > { %2376 = vmatprep.subr.bf16.mxu0 %v2942_v15 }
 0xfa7   : > { %v1443_v56 = vpop.f32.mrb[16].mxu0 }
 0xfa8   : > { %v1450_v57 = vadd.f32 %v1443_v56, %v895_v54  ;;  %v1445_v58 = vpop.f32.mrb[17].mxu0 }
 0xfa9   : > { %v1451_v59 = vadd.f32 %v1445_v58, %v897_v55  ;;  %v1447_v60 = vpop.f32.mrb[18].mxu0  ;;  %v2562_v58 = vld [vmem:[#allocation11] sm:$0xff]  }
 0xfaa   : > { %v1448_v61 = vpop.f32.mrb[19].mxu0  ;;  %v2276_v63 = vmul.f32 -1.442695, %v1450_v57  ;;  %v2564_v60 = vld [vmem:[#allocation11 + $0x8] sm:$0xff]  }
 0xfab   : > { %2658 = vtanh.f32 %v1451_v59  ;;  %v2277_v7 = vmul.f32 -1.442695, %v1451_v59  ;;  %v2566_v61 = vld [vmem:[#allocation11 + $0x10] sm:$0xff]  }
 0xfac   : > { %2660 = vpow2.f32 %v2276_v63  ;;  %v2570_v63 = vld [vmem:[#allocation11 + $0x20] sm:$0xff]  }
 0xfb5   : > { %v2659_v62 = vpop.eup %2658 }
 0xfb6   : > { %1467 = vrot.lane.b32.xlu0 %v2659_v62, %s2941_s13  ;;  %v2661_v0 = vpop.eup %2660  ;;  %v2568_v62 = vld [vmem:[#allocation11 + $0x18] sm:$0xff]  }
 0xfb7   : > { %v1458_v1 = vadd.f32 1.0, %v2661_v0  ;;  %v2572_v0 = vld [vmem:[#allocation11 + $0x28] sm:$0xff]  }
 0xfb9   : > { %2662 = vrcp.f32 %v1458_v1  ;;  %v2574_v1 = vld [vmem:[#allocation11 + $0x30] sm:$0xff]  }
 0xfc3   : > { %v2663_v2 = vpop.eup %2662 }
 0xfc4   : > { %v1465_v37 = vmul.f32 %v2663_v2, %v1398_v13  ;;  %v2569_v13 = vld [vmem:[%s3656_s11 + $0x18] sm:$0xff]  }
0x1028   : > { %v1468_v36 = vpop.permute.xlu0 %1467 }
0x1029   : > { %v1470_v3 = vmul.f32 %v2663_v2, %v1468_v36 }
0x102b   : > { %1472 = vrot.lane.b32.xlu1 %v1470_v3, %s2941_s13  ;;  %v2290_v3 = vld [vmem:[%s3718_s27] ss:$0 sm:$0xff]  ;;  %s2238_s27 = sshll.u32 %s3269_s15, 3 }
0x102c   : > { %s750_s1 = scalar_lea.vmem [#allocation14], %s2238_s27 }
0x102d   : > { %s2082_s10 = sshll.u32 %s750_s1, 4  ;;  %s3603_s10 = int_to_ptr.vmem [resolvable:$true] %s2082_s10 }
0x102e   : > { %s2850_s0 = scalar_lea.vmem %s3603_s10, 128 }
0x102f   : > { %p2851_p10 = scmp.ne.s32.totalorder %s3603_s10, %s2850_s0 }
0x1031   : > { %p2852_p4 = pnand %p2851_p10, %p3726_p1 }
0x1033   : > { %p2853_p2 = pneg %p2852_p4 }
0x109d   : > { %v1473_v4 = vpop.permute.xlu1 %1472 }
0x109e   : > { %v1475_v5 = vadd.f32 %v1473_v4, %v1465_v37  ;;  %v2291_v4 = vld [vmem:[%s3719_s9] ss:$0 sm:$0xff]  ;;  %s3723_s9 = sld [smem:[#allocation35_spill]] }
0x10a0   : > { %2664 = vtanh.f32 %v1475_v5 }
0x10a1   : > { %2666 = vpow2.f32 %v2277_v7  ;;  %v2575_v7 = vld [vmem:[%s3656_s11 + $0x30] sm:$0xff]  }
0x10aa   : > { %v2665_v6 = vpop.eup %2664 }
0x10ab   : > { %1478 = vrot.lane.b32.xlu0 %v2665_v6, %s2941_s13  ;;  %v2667_v9 = vpop.eup %2666 }
0x10ac   : > { %v1459_v24 = vadd.f32 1.0, %v2667_v9  ;;  %v2576_v9 = vld [vmem:[#allocation11 + $0x38] sm:$0xff]  }
0x10ae   : > { %2668 = vrcp.f32 %v1459_v24 }
0x10b8   : > { %v2669_v10 = vpop.eup %2668 }
0x111d   : > { %v1479_v25 = vpop.permute.xlu0 %1478 }
0x111e   : > { %v1481_v11 = vmul.f32 %v2669_v10, %v1479_v25  ;;  %v2577_v10 = vld [vmem:[%s3656_s11 + $0x38] sm:$0xff]  }
0x111f   : > { %v2578_v25 = vld [vmem:[#allocation12] sm:$0xff]  }
0x1120   : > { %v1482_v12 = vpack.c.bf16 %v1481_v11, %v1481_v11  ;;  %v2579_v11 = vld [vmem:[#allocation12 + $0x8] sm:$0xff]  }
0x1122   : > { %2278 = vmatmul.mubr.msk.bf16.vlgmr.msra.gmra.mrb[24].mxu1 %vm943_vm2, %v1482_v12  ;;  %v2580_v12 = vld [vmem:[#allocation12 + $0x10] sm:$0xff]  }
0x1123   : > { %2371 = vmatpush3.bf16.msra.mxu1 %v2559_v35  ;;  %2372 = vmatprep.mubr.msk.bf16.mxu1 %vm2943_vm4, %v2942_v15  ;;  %v2585_v35 = vld [vmem:[#allocation12 + $0x38] sm:$0xff]  }
0x1124   : > { %2396 = vmatprep.subr.bf16.mxu1 %v2942_v15 }
0x112a   : > { %2373 = vmatmul.mubr.msk.bf16.vlgmr.msra.gmra.mrb[28].mxu1 %vm1659_vm3, %v1643_v16  ;;  %v2308_v16 = vld [vmem:[%s3720_s22] ss:$0 sm:$0xff]  ;;  %s3725_s22 = sld [smem:[#allocation36_spill]] }
0x112b   : > { %2412 = vmatprep.mubr.msk.bf16.mxu1 %vm2943_vm4, %v2942_v15  ;;  %2397 = vmatpush3.bf16.msra.mxu1 %v2563_v26 }
0x112c   : > { %2398 = vmatprep.subr.bf16.mxu1 %v2942_v15 }
0x112f   : > { %2399 = vmatpush3.bf16.msra.mxu1 %v2565_v44 }
0x1130   : > { %2400 = vmatprep.subr.bf16.mxu1 %v2942_v15  ;;  %s3601_s2 = scalar_lea.hbm %s3725_s22, %s2321_s25 }
0x1133   : > { %2401 = vmatpush3.bf16.msra.mxu1 %v2567_v45 }
0x1134   : > { %2402 = vmatprep.subr.bf16.mxu1 %v2942_v15 }
0x1137   : > { %2403 = vmatpush3.bf16.msra.mxu1 %v2569_v13 }
0x1138   : > { %2404 = vmatprep.subr.bf16.mxu1 %v2942_v15 }
0x113b   : > { %2405 = vmatpush3.bf16.msra.mxu1 %v2571_v48  ;;  %v2311_v48 = vld [vmem:[%s3723_s9] ss:$0 sm:$0xff] }
0x113c   : > { %2406 = vmatprep.subr.bf16.mxu1 %v2942_v15 }
0x113f   : > { %2407 = vmatpush3.bf16.msra.mxu1 %v2573_v46 }
0x1140   : > { %2408 = vmatprep.subr.bf16.mxu1 %v2942_v15 }
0x1143   : > { %2409 = vmatpush3.bf16.msra.mxu1 %v2575_v7 }
0x1144   : > { %2410 = vmatprep.subr.bf16.mxu1 %v2942_v15 }
0x1147   : > { %2411 = vmatpush3.bf16.msra.mxu1 %v2577_v10 }
0x11f5   : > { %v1520_v23 = vpop.f32.mrb[24].mxu1 }
0x11f6   : > { %v1527_v27 = vadd.f32 %v1520_v23, %v899_v17  ;;  %v1522_v29 = vpop.f32.mrb[25].mxu1  ;;  %v2581_v17 = vld [vmem:[#allocation12 + $0x18] sm:$0xff]  }
0x11f7   : > { %v3500_v30 = vadd.f32 %v1522_v29, %v901_v18  ;;  %v1524_v31 = vpop.f32.mrb[26].mxu1  ;;  %v2582_v18 = vld [vmem:[#allocation12 + $0x20] sm:$0xff]   ;;  %v2281_v23 = vld [vmem:[#allocation9] ss:$0 sm:$0xff] }
0x11f8   : > { %v1525_v32 = vpop.f32.mrb[27].mxu1  ;;  %v2279_v14 = vmul.f32 -1.442695, %v1527_v27 }
0x11f9   : > { %2670 = vtanh.f32 %v3500_v30  ;;  %v2280_v49 = vmul.f32 -1.442695, %v3500_v30 }
0x11fa   : > { %2672 = vpow2.f32 %v2279_v14 }
0x11fd   : > { %v1697_v47 = vpop.f32.mrb[28].mxu1 }
0x11fe   : > { %v2374_v50 = vpop.f32.mrb[29].mxu1 }
0x11ff   : > { %v1700_v51 = vpop.f32.mrb[30].mxu1 }
0x1200   : > { %v2375_v52 = vpop.f32.mrb[31].mxu1 }
0x1203   : > { %v2671_v33 = vpop.eup %2670 }
0x1204   : > { %1544 = vrot.lane.b32.xlu1 %v2671_v33, %s2941_s13  ;;  %v2673_v34 = vpop.eup %2672 }
0x1205   : > { %v1535_v38 = vadd.f32 1.0, %v2673_v34 }
0x1207   : > { %2674 = vrcp.f32 %v1535_v38 }
0x1211   : > { %v2675_v39 = vpop.eup %2674 }
0x1212   : > { %v1542_v20 = vmul.f32 %v2675_v39, %v1475_v5 }
0x1276   : > { %v1545_v40 = vpop.permute.xlu1 %1544 }
0x1277   : > { %v1547_v41 = vmul.f32 %v2675_v39, %v1545_v40 }
0x1279   : > { %1549 = vrot.lane.b32.xlu0 %v1547_v41, %s2941_s13  ;;  %v2583_v41 = vld [vmem:[#allocation12 + $0x28] sm:$0xff]  }
0x12eb   : > { %v1550_v21 = vpop.permute.xlu0 %1549 }
0x12ec   : > { %v1552_v43 = vadd.f32 %v1550_v21, %v1542_v20  ;;  %v2309_v21 = vld [vmem:[%s3721_s26] ss:$0 sm:$0xff]  ;;  %s2944_s26 = smov [#allocation14]  }
0x12ee   : > { %2676 = vtanh.f32 %v1552_v43 }
0x12ef   : > { %2678 = vpow2.f32 %v2280_v49 }
0x12f8   : > { %v2677_v28 = vpop.eup %2676 }
0x12f9   : > { %1555 = vrot.lane.b32.xlu1 %v2677_v28, %s2941_s13  ;;  %v2679_v53 = vpop.eup %2678  ;;  %s3717_s13 = sld [smem:[#allocation29_spill]] }
0x12fa   : > { %v1536_v54 = vadd.f32 1.0, %v2679_v53 }
0x12fc   : > { %2680 = vrcp.f32 %v1536_v54 }
0x12ff   : > { %v2287_v2 = vld [vmem:[%s3717_s13] ss:$0 sm:$0xff]  ;;  %s2854_s13 = sshll.u32 %s2944_s26, 4  ;;  %s2855_s13 = int_to_ptr.vmem [resolvable:$false] %s2854_s13 }
0x1300   : > { %v1698_v36 = vadd.f32 %v2287_v2, %v1697_v47  ;;  %s2856_s24 = scalar_lea.vmem %s2855_s13, 256  ;;  %p2857_p5 = scmp.lt.s32.totalorder %s3603_s10, %s2855_s13 }
0x1301   : > { %p2858_p12 = scmp.lt.s32.totalorder %s2856_s24, %s2850_s0 }
0x1302   : > { %v1710_v37 = vmul.f32 %v2290_v3, %v1698_v36 }
0x1303   : > { %p2859_p11 = por %p2858_p12, %p2857_p5 }
0x1304   : > { %v1718_v5 = vadd.f32 %v2291_v4, %v1710_v37 }
0x1305   : > { %p2860_p3 = pnand %p2859_p11, %p2853_p2 }
0x1306   : > { %v2681_v55 = vpop.eup %2680  ;;  %v1719_v6 = vmax.f32 %v1718_v5, 0.0 }
0x1308   : > { %v1737_v24 = vpack.c.bf16 %v1719_v6, %v1719_v6 }
0x136b   : > { %v1556_v56 = vpop.permute.xlu1 %1555 }
0x136c   : > { %v1558_v57 = vmul.f32 %v2681_v55, %v1556_v56 }
0x136e   : > { %v1559_v59 = vpack.c.bf16 %v1558_v57, %v1558_v57 }
0x1370   : > { %2367 = vmatmul.mubr.msk.bf16.vlgmr.msra.gmra.mrb[20].mxu0 %vm943_vm2, %v1559_v59 }
0x1371   : > { %2377 = vmatpush3.bf16.msra.mxu0 %v2562_v58  ;;  %2392 = vmatprep.mubr.msk.bf16.mxu0 %vm2943_vm4, %v2942_v15 }
0x1372   : > { %2378 = vmatprep.subr.bf16.mxu0 %v2942_v15 }
0x1375   : > { %2379 = vmatpush3.bf16.msra.mxu0 %v2564_v60 }
0x1376   : > { %2380 = vmatprep.subr.bf16.mxu0 %v2942_v15 }
0x1379   : > { %2381 = vmatpush3.bf16.msra.mxu0 %v2566_v61 }
0x137a   : > { %2382 = vmatprep.subr.bf16.mxu0 %v2942_v15 }
0x137d   : > { %2383 = vmatpush3.bf16.msra.mxu0 %v2568_v62 }
0x137e   : > { %2384 = vmatprep.subr.bf16.mxu0 %v2942_v15 }
0x1381   : > { %2385 = vmatpush3.bf16.msra.mxu0 %v2570_v63 }
0x1382   : > { %2386 = vmatprep.subr.bf16.mxu0 %v2942_v15 }
0x1385   : > { %2387 = vmatpush3.bf16.msra.mxu0 %v2572_v0 }
0x1386   : > { %2388 = vmatprep.subr.bf16.mxu0 %v2942_v15 }
0x1389   : > { %2389 = vmatpush3.bf16.msra.mxu0 %v2574_v1 }
0x138a   : > { %2390 = vmatprep.subr.bf16.mxu0 %v2942_v15 }
0x138d   : > { %2391 = vmatpush3.bf16.msra.mxu0 %v2576_v9 }
0x138e   : > { %2416 = vmatprep.subr.bf16.mxu0 %v2942_v15 }
0x1390   : > { %2393 = vmatmul.mubr.bf16.vlgmr.msra.gmra.mrb[24].mxu0 %v1737_v24 }
0x1391   : > { %2432 = vmatprep.mubr.msk.bf16.mxu0 %vm2943_vm4, %v2942_v15  ;;  %2417 = vmatpush3.bf16.msra.mxu0 %v2578_v25 }
0x1392   : > { %2418 = vmatprep.subr.bf16.mxu0 %v2942_v15 }
0x1395   : > { %2419 = vmatpush3.bf16.msra.mxu0 %v2579_v11 }
0x1396   : > { %2420 = vmatprep.subr.bf16.mxu0 %v2942_v15 }
0x1399   : > { %2421 = vmatpush3.bf16.msra.mxu0 %v2580_v12 }
0x139a   : > { %2422 = vmatprep.subr.bf16.mxu0 %v2942_v15 }
0x139d   : > { %2423 = vmatpush3.bf16.msra.mxu0 %v2581_v17 }
0x139e   : > { %2424 = vmatprep.subr.bf16.mxu0 %v2942_v15 }
0x13a1   : > { %2425 = vmatpush3.bf16.msra.mxu0 %v2582_v18 }
0x13a2   : > { %2426 = vmatprep.subr.bf16.mxu0 %v2942_v15 }
0x13a5   : > { %2427 = vmatpush3.bf16.msra.mxu0 %v2583_v41 }
0x13a6   : > { %2428 = vmatprep.subr.bf16.mxu0 %v2942_v15 }
0x13a9   : > { %2429 = vmatpush3.bf16.msra.mxu0 %v2584_v8 }
0x13aa   : > { %2430 = vmatprep.subr.bf16.mxu0 %v2942_v15  ;;  %v2310_v15 = vld [vmem:[%s3722_s20] ss:$0 sm:$0xff] }
0x13ad   : > { %2431 = vmatpush3.bf16.msra.mxu0 %v2585_v35 }
0x1443   : > { %v1636_v27 = vpop.f32.mrb[20].mxu0 }
0x1444   : > { %v1637_v29 = vadd.f32 %v2281_v23, %v1636_v27  ;;  %v2368_v30 = vpop.f32.mrb[21].mxu0 }
0x1445   : > { %v1639_v31 = vpop.f32.mrb[22].mxu0 }
0x1446   : > { %v1642_v32 = vmax.f32 %v1637_v29, 0.0  ;;  %v2369_v33 = vpop.f32.mrb[23].mxu0 }
0x1448   : > { %v1720_v14 = vpack.c.bf16 %v1642_v32, %v1642_v32 }
0x144a   : > { %2413 = vmatmul.mubr.bf16.vlgmr.msra.gmra.mrb[32].mxu1 %v1720_v14 }
0x1463   : > { %v1836_v34 = vpop.f32.mrb[24].mxu0 }
0x1464   : > { %v2394_v38 = vpop.f32.mrb[25].mxu0 }
0x1465   : > { %v1839_v39 = vpop.f32.mrb[26].mxu0 }
0x1466   : > { %v2395_v40 = vpop.f32.mrb[27].mxu0 }
0x151d   : > { %v1924_v42 = vpop.f32.mrb[32].mxu1 }
0x151e   : > { %v1925_v19 = vadd.f32 %v1924_v42, %v1836_v34  ;;  %v2414_v20 = vpop.f32.mrb[33].mxu1 }
0x151f   : > { %v1927_v22 = vpop.f32.mrb[34].mxu1 }
0x1520   : > { %v1937_v43 = vadd.f32 %v2308_v16, %v1925_v19  ;;  %v2415_v26 = vpop.f32.mrb[35].mxu1 }
0x1522   : > { %v1945_v44 = vmul.f32 %v2309_v21, %v1937_v43 }
0x1524   : > { %v1953_v28 = vadd.f32 %v2310_v15, %v1945_v44 }
0x1526   : > { %v1954_v45 = vmax.f32 %v1953_v28, 0.0 }
0x1528   : > { %v1955_v13 = vpack.c.bf16 %v1954_v45, %v1954_v45 }
0x152a   : > { %2433 = vmatmul.mubr.bf16.vlgmr.msra.gmra.mrb[28].mxu0 %v1955_v13 }
0x15fd   : > { %v2061_v46 = vpop.f32.mrb[28].mxu0 }
0x15fe   : > { %v2062_v49 = vadd.f32 %v2311_v48, %v2061_v46  ;;  %v2434_v47 = vpop.f32.mrb[29].mxu0 }
0x15ff   : > { %v2064_v50 = vpop.f32.mrb[30].mxu0 }
0x1600   : > { %2067 = vst [vmem:[%s750_s1] sm:$0xff] %v2062_v49  ;;  %v2435_v51 = vpop.f32.mrb[31].mxu0 }
0x1601   : > { %2863 = shalt.err (!%p2860_p3)
}
0x1602   : > { %s2864_s15 = scalar_lea.hbm %s3601_s2, 128  ;;  %s2868_s19 = scalar_lea.hbm %s3725_s22, 256 }
0x1603   : > { %p2865_p6 = scmp.ne.s32.totalorder %s3601_s2, %s2864_s15  ;;  %p2869_p7 = scmp.lt.u32.totalorder %s3601_s2, %s3725_s22 }
0x1604   : > { %p2870_p8 = scmp.lt.u32.totalorder %s2868_s19, %s2864_s15  ;;  %p2872_p10 = scmp.lt.u32.totalorder %s2864_s15, %s3601_s2 }
0x1605   : > { %p2866_p13 = pnand %p2865_p6, %p3726_p1 }
0x1606   : > { %p2871_p9 = por %p2870_p8, %p2869_p7 }
0x1607   : > { %p2867_p0 = pneg %p2866_p13 }
0x1608   : > { %p2873_p4 = por %p2872_p10, %p2871_p9 }
0x160a   : > { %p2874_p2 = pnand %p2873_p4, %p2867_p0 }
0x160c   : > { %2877 = shalt.err (!%p2874_p2)
}
0x160d   : > { %2460 = dma.vmem_to_hbm [thread:$0]  (%p3726_p1), %s3603_s10, 128, %s3601_s2, %s2069_s23  }
0x160e PF: > { %s3727_s25 = sld [smem:[#allocation20_spill]]  ;;  %s3728_s1 = sld [smem:[#allocation24_spill]] }
0x160f   : > { %p3730_p12 = scmp.ge.s32.totalorder %s2928_s30, 2 }
0x1614   : > { %s2094_s6 = sand.u32 1, %s3727_s25   ;;  %p3729_p5 = scmp.ne.s32.totalorder %s3728_s1, 0 }
0x1615   : > { %s2095_s17 = scalar_lea.sflag [#allocation5], %s2094_s6 }
0x1616   : > { %p2479_p11 = pnand %p3730_p12, %p3729_p5 }
0x1618   : > { %2911 = dma.done.wait (!%p2479_p11), %s2095_s17, 128  }
0x1619   : > { %2913 = vsyncadd (!%p2479_p11), %s2095_s17, 4294967168  ;;  %s3731_s30 = sld [smem:[#allocation21_spill]]  ;;  %s3732_s0 = sld [smem:[#allocation22_spill]] }
0x161a   : > { %s3733_s27 = smov %s2920_s28  ;;  %s3734_s28 = smov %s2924_s29 }
0x161f   : > { %p34_p3 = scmp.ge.s32.totalorder %s3731_s30, 4   ;;  %s3735_s29 = smov %s3732_s0 }
0x1621   :  { %36 = sbr.rel (!%p34_p3) target bundleno = 21 (0x15), region = 206 }
0x1628   :  { %2100 = vsyncpa [#allocation4], 1 }
0x1629   :  { %2102 = vsyncpa [#allocation4 + $0x1], 1 }
0x162a   :  { %2103 = vsyncpa [#allocation7], 1 }
0x162b   :  { %2104 = vsyncpa [#allocation10], 1 }
0x162c   :  { %2105 = vsyncpa [#allocation13], 1 }
0x162d   :  { %2106 = vsyncpa [#allocation5], 1 }
0x162e   :  { %2108 = vsyncpa [#allocation5 + $0x1], 1 }

</bundles_post_ra>
